<compile_context>
chip_gen: v6e
topology: v6e:2x2x1
jax: 0.10.0
libtpu: 0.0.40
codegen_flags: <defaults>
</compile_context>

<pallas_src>
import functools

import numpy as np
import jax
import jax.numpy as jnp
from jax.experimental import pallas as pl
from jax.experimental.pallas import tpu as pltpu

SELU_ALPHA = 1.6732632423543772
SELU_SCALE = 1.0507009873554805


def _selu(x):
    return SELU_SCALE * jnp.where(x > 0, x, SELU_ALPHA * (jnp.exp(x) - 1.0))


def seriesnet_kernel(x_ref, smat_ref, w01_ref, bconv_ref, wsn_ref, bsn_ref,
                     wfin_ref, bfin_ref, o_ref, *, nb_block, bc):
    x = x_ref[...]                               # (B*C, L) f32 residual stream
    acc = jnp.zeros_like(x)                      # f32 skip accumulator

    for i in range(nb_block):                    # static unroll over gated blocks
        xb = x.astype(jnp.bfloat16)

        # ReflectionPad1d((d, 0)) + dilation-d gather xs[:, t] = x[:, |t - d|]
        # as one (B*C, L) @ (L, L) one-hot matmul (one-hot is exact in bf16).
        xs = jnp.dot(xb, smat_ref[i],
                     preferred_element_type=jnp.float32).astype(jnp.bfloat16)

        # kernel_size=2 dilated conv: both taps fused in a single MXU call on
        # the tile-aligned sublane stack [xs; x].
        xcat = jnp.concatenate([xs, xb], axis=0)                        # (2BC, L) bf16
        h = _selu(jnp.dot(w01_ref[i], xcat,
                          preferred_element_type=jnp.float32)
                  + bconv_ref[i])                                       # (BF, L) f32

        # skipout + network_in 1x1 convs fused into one MXU call; split lands
        # on the 8-sublane tile boundary (free).
        sn = (jnp.dot(wsn_ref[i], h.astype(jnp.bfloat16),
                      preferred_element_type=jnp.float32)
              + bsn_ref[i])                                             # (2BC, L) f32
        acc = acc + sn[:bc]                      # skip connection
        x = x + sn[bc:]                          # residual connection
        # TODO(synk): nn.Dropout on the last nb_block_dropped skips is
        # stochastic in train mode; treated as identity here (eval semantics).

    out = jnp.maximum(acc, 0.0).astype(jnp.bfloat16)          # ReLU
    o_ref[...] = (jnp.dot(wfin_ref[...], out,
                          preferred_element_type=jnp.float32) + bfin_ref[...])


def _build_shift_mats(nb_block, L):
    """One-hot matrices S_i with (x @ S_i)[:, t] = x[:, |t - 2**i|]."""
    t = np.arange(L)
    mats = np.zeros((nb_block, L, L), np.float32)
    for i in range(nb_block):
        d = 2 ** i
        mats[i, np.abs(t - d), t] = 1.0
    return jnp.asarray(mats, dtype=jnp.bfloat16)   # 0/1 exact in bf16


def _block_diag_over_batch(w, B):
    """(NB, O, I) -> (NB, B*O, B*I) per-batch block-diagonal copy of w."""
    eye_b = jnp.eye(B, dtype=w.dtype)
    nb, o, i = w.shape
    return jnp.einsum('ab,noi->naobi', eye_b, w).reshape(nb, B * o, B * i)


def seriesnet_forward(x, params):
    (w0, w1, bconv, wnet, bnet, wskip, bskip, wfin, bfin) = params
    B, C, L = x.shape
    nb_block, F = w0.shape[0], w0.shape[1]
    # Reflection pad |t - d| only matches ReflectionPad1d while max dilation < L.
    assert 2 ** (nb_block - 1) <= L - 1, "max dilation must fit the sequence"
    BC = B * C

    # ---- host-side weight fusion / batch folding (pure XLA, outside kernel) ----
    smat = _build_shift_mats(nb_block, L)                              # (NB, L, L) bf16
    # conv taps: rows -> (b, f); cols -> [xs rows (b, c) ; x rows (b, c)]
    w01 = jnp.concatenate([_block_diag_over_batch(w0, B),
                           _block_diag_over_batch(w1, B)], axis=-1)    # (NB, BF, 2BC)
    bconv_bd = jnp.tile(bconv, (1, B, 1))                              # (NB, BF, 1)
    # skip/net: rows -> [skip (b, c) ; net (b, c)], aligned with x_flat rows
    wsn = jnp.concatenate([_block_diag_over_batch(wskip, B),
                           _block_diag_over_batch(wnet, B)], axis=1)   # (NB, 2BC, BF)
    bsn = jnp.concatenate([jnp.tile(bskip, (1, B, 1)),
                           jnp.tile(bnet, (1, B, 1))], axis=1)         # (NB, 2BC, 1)
    wfin_bd = _block_diag_over_batch(wfin[None], B)[0]                 # (BC, BC)
    bfin_bd = jnp.tile(bfin, (B, 1))                                   # (BC, 1)

    x_flat = x.reshape(BC, L)                                          # (B*C, L)

    kern = functools.partial(seriesnet_kernel, nb_block=nb_block, bc=BC)
    vmem = pl.BlockSpec(memory_space=pltpu.MemorySpace.VMEM)

    out_flat = pl.pallas_call(
        kern,
        out_shape=jax.ShapeDtypeStruct((BC, L), jnp.float32),
        in_specs=[vmem] * 8,
        out_specs=vmem,
    )(x_flat, smat,
      w01.astype(jnp.bfloat16), bconv_bd,
      wsn.astype(jnp.bfloat16), bsn,
      wfin_bd.astype(jnp.bfloat16), bfin_bd)

    return out_flat.reshape(B, C, L)


def seriesnet_reference(x, params):
    """Pure-JAX f32 reference matching the PyTorch forward (eval mode)."""
    (w0, w1, bconv, wnet, bnet, wskip, bskip, wfin, bfin) = params
    nb_block = w0.shape[0]
    L = x.shape[-1]
    out = jnp.zeros_like(x)
    for i in range(nb_block):
        d = 2 ** i
        # ReflectionPad1d((d, 0)): left prefix = x[..., d], x[..., d-1], ..., x[..., 1]
        prefix = x[..., 1:d + 1][..., ::-1]
        xp = jnp.concatenate([prefix, x], axis=-1)           # (B, C, L + d)
        conv = (jnp.einsum('fc,bcl->bfl', w0[i], xp[..., :L])
                + jnp.einsum('fc,bcl->bfl', w1[i], xp[..., d:])
                + bconv[i][None])
        h = SELU_SCALE * jnp.where(conv > 0, conv, SELU_ALPHA * (jnp.exp(conv) - 1.0))
        skip = jnp.einsum('cf,bfl->bcl', wskip[i], h) + bskip[i][None]
        net_in = jnp.einsum('cf,bfl->bcl', wnet[i], h) + bnet[i][None]
        x = x + net_in
        out = out + skip
    out = jnp.maximum(out, 0.0)
    out = jnp.einsum('oc,bcl->bol', wfin, out) + bfin[None]
    return out


def init_params(key, in_channels, nb_block, nb_filter):
    """Deterministic PyTorch-style uniform(-1/sqrt(fan_in), 1/sqrt(fan_in)) init."""
    keys = jax.random.split(key, 9)

    def u(k, shape, fan_in):
        bound = 1.0 / jnp.sqrt(jnp.float32(fan_in))
        return jax.random.uniform(k, shape, jnp.float32, -bound, bound)

    C, F, NB = in_channels, nb_filter, nb_block
    w0 = u(keys[0], (NB, F, C), C * 2)          # conv weight tap 0
    w1 = u(keys[1], (NB, F, C), C * 2)          # conv weight tap 1
    bconv = u(keys[2], (NB, F, 1), C * 2)
    wnet = u(keys[3], (NB, C, F), F)            # network_in 1x1
    bnet = u(keys[4], (NB, C, 1), F)
    wskip = u(keys[5], (NB, C, F), F)           # skipout 1x1
    bskip = u(keys[6], (NB, C, 1), F)
    wfin = u(keys[7], (C, C), C)                # conv_final 1x1
    bfin = u(keys[8], (C, 1), C)
    return (w0, w1, bconv, wnet, bnet, wskip, bskip, wfin, bfin)


if __name__ == "__main__":
    B = 2                 # batch
    C = 4                 # in_channels
    F = 32                # gate_nb_filter
    NB_BLOCK = 7          # nb_causal_block  (max dilation 64 -> L must be > 64)
    L = 128               # sequence length  (= pts_need_for_pred for 7 blocks)

    key = jax.random.PRNGKey(0)
    kx, kp = jax.random.split(key)
    x = jax.random.normal(kx, (B, C, L), dtype=jnp.float32)
    params = init_params(kp, C, NB_BLOCK, F)

    out = jax.block_until_ready(seriesnet_forward(x, params))
    ref = jax.block_until_ready(seriesnet_reference(x, params))

    assert out.shape == (B, C, L)
    # bf16 MXU operands with f32 accumulation/state -> mixed-precision tolerance.
    assert jnp.allclose(out, ref, rtol=2e-2, atol=2e-2), (
        f"max abs err {jnp.max(jnp.abs(out - ref))}")

    print("KERNEL_OK")
</pallas_src>

<mosaic_0001>
module attributes {stable_mosaic.version = 11 : i64} {
  func.func @seriesnet_kernel(%arg0: memref<8x128xf32, #tpu.memory_space<vmem>>, %arg1: memref<7x128x128xbf16, #tpu.memory_space<vmem>>, %arg2: memref<7x64x16xbf16, #tpu.memory_space<vmem>>, %arg3: memref<7x64x1xf32, #tpu.memory_space<vmem>>, %arg4: memref<7x16x64xbf16, #tpu.memory_space<vmem>>, %arg5: memref<7x16x1xf32, #tpu.memory_space<vmem>>, %arg6: memref<8x8xbf16, #tpu.memory_space<vmem>>, %arg7: memref<8x1xf32, #tpu.memory_space<vmem>>, %arg8: memref<8x128xf32, #tpu.memory_space<vmem>>) attributes {dimension_semantics = [], scalar_prefetch = 0 : i64, scratch_operands = 0 : i64, tpu.core_type = #tpu.core_type<tc>} {
    %c0 = arith.constant 0 : index
    %c0_0 = arith.constant 0 : index
    %0 = vector.load %arg0[%c0, %c0_0] : memref<8x128xf32, #tpu.memory_space<vmem>>, vector<8x128xf32>
    %cst = arith.constant 0.000000e+00 : f32
    %1 = vector.broadcast %cst : f32 to vector<8x128xf32>
    %2 = arith.truncf %0 : vector<8x128xf32> to vector<8x128xbf16>
    %c0_1 = arith.constant 0 : index
    %c0_2 = arith.constant 0 : index
    %c0_3 = arith.constant 0 : index
    %3 = vector.load %arg1[%c0_1, %c0_2, %c0_3] : memref<7x128x128xbf16, #tpu.memory_space<vmem>>, vector<1x128x128xbf16>
    %4 = vector.shape_cast %3 : vector<1x128x128xbf16> to vector<128x128xbf16>
    %cst_4 = arith.constant dense<0.000000e+00> : vector<8x128xf32>
    %5 = tpu.matmul %2, %4, %cst_4 {dimension_numbers = #tpu.dot_dimension_numbers<[1], [0], [0], [1], [0, 0, 1, 1], [], []>} : vector<8x128xbf16>, vector<128x128xbf16>, vector<8x128xf32> -> vector<8x128xf32>
    %6 = arith.truncf %5 : vector<8x128xf32> to vector<8x128xbf16>
    %7 = tpu.concatenate %6, %2 in 0 : vector<8x128xbf16>, vector<8x128xbf16> -> vector<16x128xbf16>
    %c0_5 = arith.constant 0 : index
    %c0_6 = arith.constant 0 : index
    %c0_7 = arith.constant 0 : index
    %8 = vector.load %arg2[%c0_5, %c0_6, %c0_7] : memref<7x64x16xbf16, #tpu.memory_space<vmem>>, vector<1x64x16xbf16>
    %9 = vector.shape_cast %8 : vector<1x64x16xbf16> to vector<64x16xbf16>
    %cst_8 = arith.constant dense<0.000000e+00> : vector<64x128xf32>
    %10 = tpu.matmul %9, %7, %cst_8 {dimension_numbers = #tpu.dot_dimension_numbers<[1], [0], [0], [1], [0, 0, 1, 1], [], []>} : vector<64x16xbf16>, vector<16x128xbf16>, vector<64x128xf32> -> vector<64x128xf32>
    %c0_9 = arith.constant 0 : index
    %c0_10 = arith.constant 0 : index
    %c0_11 = arith.constant 0 : index
    %11 = vector.load %arg3[%c0_9, %c0_10, %c0_11] : memref<7x64x1xf32, #tpu.memory_space<vmem>>, vector<1x64x1xf32>
    %12 = vector.shape_cast %11 : vector<1x64x1xf32> to vector<64x1xf32>
    %13 = vector.broadcast %12 : vector<64x1xf32> to vector<64x128xf32>
    %14 = arith.addf %10, %13 : vector<64x128xf32>
    %cst_12 = arith.constant 0.000000e+00 : f32
    %15 = vector.broadcast %cst_12 : f32 to vector<64x128xf32>
    %16 = arith.cmpf ogt, %14, %15 : vector<64x128xf32>
    %17 = math.exp %14 : vector<64x128xf32>
    %cst_13 = arith.constant 1.000000e+00 : f32
    %18 = vector.broadcast %cst_13 : f32 to vector<64x128xf32>
    %19 = arith.subf %17, %18 : vector<64x128xf32>
    %cst_14 = arith.constant 1.67326319 : f32
    %20 = vector.broadcast %cst_14 : f32 to vector<64x128xf32>
    %21 = arith.mulf %20, %19 : vector<64x128xf32>
    %22 = arith.select %16, %14, %21 : vector<64x128xi1>, vector<64x128xf32>
    %cst_15 = arith.constant 1.05070102 : f32
    %23 = vector.broadcast %cst_15 : f32 to vector<64x128xf32>
    %24 = arith.mulf %23, %22 : vector<64x128xf32>
    %c0_16 = arith.constant 0 : index
    %c0_17 = arith.constant 0 : index
    %c0_18 = arith.constant 0 : index
    %25 = vector.load %arg4[%c0_16, %c0_17, %c0_18] : memref<7x16x64xbf16, #tpu.memory_space<vmem>>, vector<1x16x64xbf16>
    %26 = vector.shape_cast %25 : vector<1x16x64xbf16> to vector<16x64xbf16>
    %27 = arith.truncf %24 : vector<64x128xf32> to vector<64x128xbf16>
    %cst_19 = arith.constant dense<0.000000e+00> : vector<16x128xf32>
    %28 = tpu.matmul %26, %27, %cst_19 {dimension_numbers = #tpu.dot_dimension_numbers<[1], [0], [0], [1], [0, 0, 1, 1], [], []>} : vector<16x64xbf16>, vector<64x128xbf16>, vector<16x128xf32> -> vector<16x128xf32>
    %c0_20 = arith.constant 0 : index
    %c0_21 = arith.constant 0 : index
    %c0_22 = arith.constant 0 : index
    %29 = vector.load %arg5[%c0_20, %c0_21, %c0_22] : memref<7x16x1xf32, #tpu.memory_space<vmem>>, vector<1x16x1xf32>
    %30 = vector.shape_cast %29 : vector<1x16x1xf32> to vector<16x1xf32>
    %31 = vector.broadcast %30 : vector<16x1xf32> to vector<16x128xf32>
    %32 = arith.addf %28, %31 : vector<16x128xf32>
    %33 = vector.extract_strided_slice %32 {offsets = [0, 0], sizes = [8, 128], strides = [1, 1]} : vector<16x128xf32> to vector<8x128xf32>
    %34 = arith.addf %1, %33 : vector<8x128xf32>
    %35 = vector.extract_strided_slice %32 {offsets = [8, 0], sizes = [8, 128], strides = [1, 1]} : vector<16x128xf32> to vector<8x128xf32>
    %36 = arith.addf %0, %35 : vector<8x128xf32>
    %37 = arith.truncf %36 : vector<8x128xf32> to vector<8x128xbf16>
    %c1 = arith.constant 1 : index
    %c0_23 = arith.constant 0 : index
    %c0_24 = arith.constant 0 : index
    %38 = vector.load %arg1[%c1, %c0_23, %c0_24] : memref<7x128x128xbf16, #tpu.memory_space<vmem>>, vector<1x128x128xbf16>
    %39 = vector.shape_cast %38 : vector<1x128x128xbf16> to vector<128x128xbf16>
    %cst_25 = arith.constant dense<0.000000e+00> : vector<8x128xf32>
    %40 = tpu.matmul %37, %39, %cst_25 {dimension_numbers = #tpu.dot_dimension_numbers<[1], [0], [0], [1], [0, 0, 1, 1], [], []>} : vector<8x128xbf16>, vector<128x128xbf16>, vector<8x128xf32> -> vector<8x128xf32>
    %41 = arith.truncf %40 : vector<8x128xf32> to vector<8x128xbf16>
    %42 = tpu.concatenate %41, %37 in 0 : vector<8x128xbf16>, vector<8x128xbf16> -> vector<16x128xbf16>
    %c1_26 = arith.constant 1 : index
    %c0_27 = arith.constant 0 : index
    %c0_28 = arith.constant 0 : index
    %43 = vector.load %arg2[%c1_26, %c0_27, %c0_28] : memref<7x64x16xbf16, #tpu.memory_space<vmem>>, vector<1x64x16xbf16>
    %44 = vector.shape_cast %43 : vector<1x64x16xbf16> to vector<64x16xbf16>
    %cst_29 = arith.constant dense<0.000000e+00> : vector<64x128xf32>
    %45 = tpu.matmul %44, %42, %cst_29 {dimension_numbers = #tpu.dot_dimension_numbers<[1], [0], [0], [1], [0, 0, 1, 1], [], []>} : vector<64x16xbf16>, vector<16x128xbf16>, vector<64x128xf32> -> vector<64x128xf32>
    %c1_30 = arith.constant 1 : index
    %c0_31 = arith.constant 0 : index
    %c0_32 = arith.constant 0 : index
    %46 = vector.load %arg3[%c1_30, %c0_31, %c0_32] : memref<7x64x1xf32, #tpu.memory_space<vmem>>, vector<1x64x1xf32>
    %47 = vector.shape_cast %46 : vector<1x64x1xf32> to vector<64x1xf32>
    %48 = vector.broadcast %47 : vector<64x1xf32> to vector<64x128xf32>
    %49 = arith.addf %45, %48 : vector<64x128xf32>
    %cst_33 = arith.constant 0.000000e+00 : f32
    %50 = vector.broadcast %cst_33 : f32 to vector<64x128xf32>
    %51 = arith.cmpf ogt, %49, %50 : vector<64x128xf32>
    %52 = math.exp %49 : vector<64x128xf32>
    %cst_34 = arith.constant 1.000000e+00 : f32
    %53 = vector.broadcast %cst_34 : f32 to vector<64x128xf32>
    %54 = arith.subf %52, %53 : vector<64x128xf32>
    %cst_35 = arith.constant 1.67326319 : f32
    %55 = vector.broadcast %cst_35 : f32 to vector<64x128xf32>
    %56 = arith.mulf %55, %54 : vector<64x128xf32>
    %57 = arith.select %51, %49, %56 : vector<64x128xi1>, vector<64x128xf32>
    %cst_36 = arith.constant 1.05070102 : f32
    %58 = vector.broadcast %cst_36 : f32 to vector<64x128xf32>
    %59 = arith.mulf %58, %57 : vector<64x128xf32>
    %c1_37 = arith.constant 1 : index
    %c0_38 = arith.constant 0 : index
    %c0_39 = arith.constant 0 : index
    %60 = vector.load %arg4[%c1_37, %c0_38, %c0_39] : memref<7x16x64xbf16, #tpu.memory_space<vmem>>, vector<1x16x64xbf16>
    %61 = vector.shape_cast %60 : vector<1x16x64xbf16> to vector<16x64xbf16>
    %62 = arith.truncf %59 : vector<64x128xf32> to vector<64x128xbf16>
    %cst_40 = arith.constant dense<0.000000e+00> : vector<16x128xf32>
    %63 = tpu.matmul %61, %62, %cst_40 {dimension_numbers = #tpu.dot_dimension_numbers<[1], [0], [0], [1], [0, 0, 1, 1], [], []>} : vector<16x64xbf16>, vector<64x128xbf16>, vector<16x128xf32> -> vector<16x128xf32>
    %c1_41 = arith.constant 1 : index
    %c0_42 = arith.constant 0 : index
    %c0_43 = arith.constant 0 : index
    %64 = vector.load %arg5[%c1_41, %c0_42, %c0_43] : memref<7x16x1xf32, #tpu.memory_space<vmem>>, vector<1x16x1xf32>
    %65 = vector.shape_cast %64 : vector<1x16x1xf32> to vector<16x1xf32>
    %66 = vector.broadcast %65 : vector<16x1xf32> to vector<16x128xf32>
    %67 = arith.addf %63, %66 : vector<16x128xf32>
    %68 = vector.extract_strided_slice %67 {offsets = [0, 0], sizes = [8, 128], strides = [1, 1]} : vector<16x128xf32> to vector<8x128xf32>
    %69 = arith.addf %34, %68 : vector<8x128xf32>
    %70 = vector.extract_strided_slice %67 {offsets = [8, 0], sizes = [8, 128], strides = [1, 1]} : vector<16x128xf32> to vector<8x128xf32>
    %71 = arith.addf %36, %70 : vector<8x128xf32>
    %72 = arith.truncf %71 : vector<8x128xf32> to vector<8x128xbf16>
    %c2 = arith.constant 2 : index
    %c0_44 = arith.constant 0 : index
    %c0_45 = arith.constant 0 : index
    %73 = vector.load %arg1[%c2, %c0_44, %c0_45] : memref<7x128x128xbf16, #tpu.memory_space<vmem>>, vector<1x128x128xbf16>
    %74 = vector.shape_cast %73 : vector<1x128x128xbf16> to vector<128x128xbf16>
    %cst_46 = arith.constant dense<0.000000e+00> : vector<8x128xf32>
    %75 = tpu.matmul %72, %74, %cst_46 {dimension_numbers = #tpu.dot_dimension_numbers<[1], [0], [0], [1], [0, 0, 1, 1], [], []>} : vector<8x128xbf16>, vector<128x128xbf16>, vector<8x128xf32> -> vector<8x128xf32>
    %76 = arith.truncf %75 : vector<8x128xf32> to vector<8x128xbf16>
    %77 = tpu.concatenate %76, %72 in 0 : vector<8x128xbf16>, vector<8x128xbf16> -> vector<16x128xbf16>
    %c2_47 = arith.constant 2 : index
    %c0_48 = arith.constant 0 : index
    %c0_49 = arith.constant 0 : index
    %78 = vector.load %arg2[%c2_47, %c0_48, %c0_49] : memref<7x64x16xbf16, #tpu.memory_space<vmem>>, vector<1x64x16xbf16>
    %79 = vector.shape_cast %78 : vector<1x64x16xbf16> to vector<64x16xbf16>
    %cst_50 = arith.constant dense<0.000000e+00> : vector<64x128xf32>
    %80 = tpu.matmul %79, %77, %cst_50 {dimension_numbers = #tpu.dot_dimension_numbers<[1], [0], [0], [1], [0, 0, 1, 1], [], []>} : vector<64x16xbf16>, vector<16x128xbf16>, vector<64x128xf32> -> vector<64x128xf32>
    %c2_51 = arith.constant 2 : index
    %c0_52 = arith.constant 0 : index
    %c0_53 = arith.constant 0 : index
    %81 = vector.load %arg3[%c2_51, %c0_52, %c0_53] : memref<7x64x1xf32, #tpu.memory_space<vmem>>, vector<1x64x1xf32>
    %82 = vector.shape_cast %81 : vector<1x64x1xf32> to vector<64x1xf32>
    %83 = vector.broadcast %82 : vector<64x1xf32> to vector<64x128xf32>
    %84 = arith.addf %80, %83 : vector<64x128xf32>
    %cst_54 = arith.constant 0.000000e+00 : f32
    %85 = vector.broadcast %cst_54 : f32 to vector<64x128xf32>
    %86 = arith.cmpf ogt, %84, %85 : vector<64x128xf32>
    %87 = math.exp %84 : vector<64x128xf32>
    %cst_55 = arith.constant 1.000000e+00 : f32
    %88 = vector.broadcast %cst_55 : f32 to vector<64x128xf32>
    %89 = arith.subf %87, %88 : vector<64x128xf32>
    %cst_56 = arith.constant 1.67326319 : f32
    %90 = vector.broadcast %cst_56 : f32 to vector<64x128xf32>
    %91 = arith.mulf %90, %89 : vector<64x128xf32>
    %92 = arith.select %86, %84, %91 : vector<64x128xi1>, vector<64x128xf32>
    %cst_57 = arith.constant 1.05070102 : f32
    %93 = vector.broadcast %cst_57 : f32 to vector<64x128xf32>
    %94 = arith.mulf %93, %92 : vector<64x128xf32>
    %c2_58 = arith.constant 2 : index
    %c0_59 = arith.constant 0 : index
    %c0_60 = arith.constant 0 : index
    %95 = vector.load %arg4[%c2_58, %c0_59, %c0_60] : memref<7x16x64xbf16, #tpu.memory_space<vmem>>, vector<1x16x64xbf16>
    %96 = vector.shape_cast %95 : vector<1x16x64xbf16> to vector<16x64xbf16>
    %97 = arith.truncf %94 : vector<64x128xf32> to vector<64x128xbf16>
    %cst_61 = arith.constant dense<0.000000e+00> : vector<16x128xf32>
    %98 = tpu.matmul %96, %97, %cst_61 {dimension_numbers = #tpu.dot_dimension_numbers<[1], [0], [0], [1], [0, 0, 1, 1], [], []>} : vector<16x64xbf16>, vector<64x128xbf16>, vector<16x128xf32> -> vector<16x128xf32>
    %c2_62 = arith.constant 2 : index
    %c0_63 = arith.constant 0 : index
    %c0_64 = arith.constant 0 : index
    %99 = vector.load %arg5[%c2_62, %c0_63, %c0_64] : memref<7x16x1xf32, #tpu.memory_space<vmem>>, vector<1x16x1xf32>
    %100 = vector.shape_cast %99 : vector<1x16x1xf32> to vector<16x1xf32>
    %101 = vector.broadcast %100 : vector<16x1xf32> to vector<16x128xf32>
    %102 = arith.addf %98, %101 : vector<16x128xf32>
    %103 = vector.extract_strided_slice %102 {offsets = [0, 0], sizes = [8, 128], strides = [1, 1]} : vector<16x128xf32> to vector<8x128xf32>
    %104 = arith.addf %69, %103 : vector<8x128xf32>
    %105 = vector.extract_strided_slice %102 {offsets = [8, 0], sizes = [8, 128], strides = [1, 1]} : vector<16x128xf32> to vector<8x128xf32>
    %106 = arith.addf %71, %105 : vector<8x128xf32>
    %107 = arith.truncf %106 : vector<8x128xf32> to vector<8x128xbf16>
    %c3 = arith.constant 3 : index
    %c0_65 = arith.constant 0 : index
    %c0_66 = arith.constant 0 : index
    %108 = vector.load %arg1[%c3, %c0_65, %c0_66] : memref<7x128x128xbf16, #tpu.memory_space<vmem>>, vector<1x128x128xbf16>
    %109 = vector.shape_cast %108 : vector<1x128x128xbf16> to vector<128x128xbf16>
    %cst_67 = arith.constant dense<0.000000e+00> : vector<8x128xf32>
    %110 = tpu.matmul %107, %109, %cst_67 {dimension_numbers = #tpu.dot_dimension_numbers<[1], [0], [0], [1], [0, 0, 1, 1], [], []>} : vector<8x128xbf16>, vector<128x128xbf16>, vector<8x128xf32> -> vector<8x128xf32>
    %111 = arith.truncf %110 : vector<8x128xf32> to vector<8x128xbf16>
    %112 = tpu.concatenate %111, %107 in 0 : vector<8x128xbf16>, vector<8x128xbf16> -> vector<16x128xbf16>
    %c3_68 = arith.constant 3 : index
    %c0_69 = arith.constant 0 : index
    %c0_70 = arith.constant 0 : index
    %113 = vector.load %arg2[%c3_68, %c0_69, %c0_70] : memref<7x64x16xbf16, #tpu.memory_space<vmem>>, vector<1x64x16xbf16>
    %114 = vector.shape_cast %113 : vector<1x64x16xbf16> to vector<64x16xbf16>
    %cst_71 = arith.constant dense<0.000000e+00> : vector<64x128xf32>
    %115 = tpu.matmul %114, %112, %cst_71 {dimension_numbers = #tpu.dot_dimension_numbers<[1], [0], [0], [1], [0, 0, 1, 1], [], []>} : vector<64x16xbf16>, vector<16x128xbf16>, vector<64x128xf32> -> vector<64x128xf32>
    %c3_72 = arith.constant 3 : index
    %c0_73 = arith.constant 0 : index
    %c0_74 = arith.constant 0 : index
    %116 = vector.load %arg3[%c3_72, %c0_73, %c0_74] : memref<7x64x1xf32, #tpu.memory_space<vmem>>, vector<1x64x1xf32>
    %117 = vector.shape_cast %116 : vector<1x64x1xf32> to vector<64x1xf32>
    %118 = vector.broadcast %117 : vector<64x1xf32> to vector<64x128xf32>
    %119 = arith.addf %115, %118 : vector<64x128xf32>
    %cst_75 = arith.constant 0.000000e+00 : f32
    %120 = vector.broadcast %cst_75 : f32 to vector<64x128xf32>
    %121 = arith.cmpf ogt, %119, %120 : vector<64x128xf32>
    %122 = math.exp %119 : vector<64x128xf32>
    %cst_76 = arith.constant 1.000000e+00 : f32
    %123 = vector.broadcast %cst_76 : f32 to vector<64x128xf32>
    %124 = arith.subf %122, %123 : vector<64x128xf32>
    %cst_77 = arith.constant 1.67326319 : f32
    %125 = vector.broadcast %cst_77 : f32 to vector<64x128xf32>
    %126 = arith.mulf %125, %124 : vector<64x128xf32>
    %127 = arith.select %121, %119, %126 : vector<64x128xi1>, vector<64x128xf32>
    %cst_78 = arith.constant 1.05070102 : f32
    %128 = vector.broadcast %cst_78 : f32 to vector<64x128xf32>
    %129 = arith.mulf %128, %127 : vector<64x128xf32>
    %c3_79 = arith.constant 3 : index
    %c0_80 = arith.constant 0 : index
    %c0_81 = arith.constant 0 : index
    %130 = vector.load %arg4[%c3_79, %c0_80, %c0_81] : memref<7x16x64xbf16, #tpu.memory_space<vmem>>, vector<1x16x64xbf16>
    %131 = vector.shape_cast %130 : vector<1x16x64xbf16> to vector<16x64xbf16>
    %132 = arith.truncf %129 : vector<64x128xf32> to vector<64x128xbf16>
    %cst_82 = arith.constant dense<0.000000e+00> : vector<16x128xf32>
    %133 = tpu.matmul %131, %132, %cst_82 {dimension_numbers = #tpu.dot_dimension_numbers<[1], [0], [0], [1], [0, 0, 1, 1], [], []>} : vector<16x64xbf16>, vector<64x128xbf16>, vector<16x128xf32> -> vector<16x128xf32>
    %c3_83 = arith.constant 3 : index
    %c0_84 = arith.constant 0 : index
    %c0_85 = arith.constant 0 : index
    %134 = vector.load %arg5[%c3_83, %c0_84, %c0_85] : memref<7x16x1xf32, #tpu.memory_space<vmem>>, vector<1x16x1xf32>
    %135 = vector.shape_cast %134 : vector<1x16x1xf32> to vector<16x1xf32>
    %136 = vector.broadcast %135 : vector<16x1xf32> to vector<16x128xf32>
    %137 = arith.addf %133, %136 : vector<16x128xf32>
    %138 = vector.extract_strided_slice %137 {offsets = [0, 0], sizes = [8, 128], strides = [1, 1]} : vector<16x128xf32> to vector<8x128xf32>
    %139 = arith.addf %104, %138 : vector<8x128xf32>
    %140 = vector.extract_strided_slice %137 {offsets = [8, 0], sizes = [8, 128], strides = [1, 1]} : vector<16x128xf32> to vector<8x128xf32>
    %141 = arith.addf %106, %140 : vector<8x128xf32>
    %142 = arith.truncf %141 : vector<8x128xf32> to vector<8x128xbf16>
    %c4 = arith.constant 4 : index
    %c0_86 = arith.constant 0 : index
    %c0_87 = arith.constant 0 : index
    %143 = vector.load %arg1[%c4, %c0_86, %c0_87] : memref<7x128x128xbf16, #tpu.memory_space<vmem>>, vector<1x128x128xbf16>
    %144 = vector.shape_cast %143 : vector<1x128x128xbf16> to vector<128x128xbf16>
    %cst_88 = arith.constant dense<0.000000e+00> : vector<8x128xf32>
    %145 = tpu.matmul %142, %144, %cst_88 {dimension_numbers = #tpu.dot_dimension_numbers<[1], [0], [0], [1], [0, 0, 1, 1], [], []>} : vector<8x128xbf16>, vector<128x128xbf16>, vector<8x128xf32> -> vector<8x128xf32>
    %146 = arith.truncf %145 : vector<8x128xf32> to vector<8x128xbf16>
    %147 = tpu.concatenate %146, %142 in 0 : vector<8x128xbf16>, vector<8x128xbf16> -> vector<16x128xbf16>
    %c4_89 = arith.constant 4 : index
    %c0_90 = arith.constant 0 : index
    %c0_91 = arith.constant 0 : index
    %148 = vector.load %arg2[%c4_89, %c0_90, %c0_91] : memref<7x64x16xbf16, #tpu.memory_space<vmem>>, vector<1x64x16xbf16>
    %149 = vector.shape_cast %148 : vector<1x64x16xbf16> to vector<64x16xbf16>
    %cst_92 = arith.constant dense<0.000000e+00> : vector<64x128xf32>
    %150 = tpu.matmul %149, %147, %cst_92 {dimension_numbers = #tpu.dot_dimension_numbers<[1], [0], [0], [1], [0, 0, 1, 1], [], []>} : vector<64x16xbf16>, vector<16x128xbf16>, vector<64x128xf32> -> vector<64x128xf32>
    %c4_93 = arith.constant 4 : index
    %c0_94 = arith.constant 0 : index
    %c0_95 = arith.constant 0 : index
    %151 = vector.load %arg3[%c4_93, %c0_94, %c0_95] : memref<7x64x1xf32, #tpu.memory_space<vmem>>, vector<1x64x1xf32>
    %152 = vector.shape_cast %151 : vector<1x64x1xf32> to vector<64x1xf32>
    %153 = vector.broadcast %152 : vector<64x1xf32> to vector<64x128xf32>
    %154 = arith.addf %150, %153 : vector<64x128xf32>
    %cst_96 = arith.constant 0.000000e+00 : f32
    %155 = vector.broadcast %cst_96 : f32 to vector<64x128xf32>
    %156 = arith.cmpf ogt, %154, %155 : vector<64x128xf32>
    %157 = math.exp %154 : vector<64x128xf32>
    %cst_97 = arith.constant 1.000000e+00 : f32
    %158 = vector.broadcast %cst_97 : f32 to vector<64x128xf32>
    %159 = arith.subf %157, %158 : vector<64x128xf32>
    %cst_98 = arith.constant 1.67326319 : f32
    %160 = vector.broadcast %cst_98 : f32 to vector<64x128xf32>
    %161 = arith.mulf %160, %159 : vector<64x128xf32>
    %162 = arith.select %156, %154, %161 : vector<64x128xi1>, vector<64x128xf32>
    %cst_99 = arith.constant 1.05070102 : f32
    %163 = vector.broadcast %cst_99 : f32 to vector<64x128xf32>
    %164 = arith.mulf %163, %162 : vector<64x128xf32>
    %c4_100 = arith.constant 4 : index
    %c0_101 = arith.constant 0 : index
    %c0_102 = arith.constant 0 : index
    %165 = vector.load %arg4[%c4_100, %c0_101, %c0_102] : memref<7x16x64xbf16, #tpu.memory_space<vmem>>, vector<1x16x64xbf16>
    %166 = vector.shape_cast %165 : vector<1x16x64xbf16> to vector<16x64xbf16>
    %167 = arith.truncf %164 : vector<64x128xf32> to vector<64x128xbf16>
    %cst_103 = arith.constant dense<0.000000e+00> : vector<16x128xf32>
    %168 = tpu.matmul %166, %167, %cst_103 {dimension_numbers = #tpu.dot_dimension_numbers<[1], [0], [0], [1], [0, 0, 1, 1], [], []>} : vector<16x64xbf16>, vector<64x128xbf16>, vector<16x128xf32> -> vector<16x128xf32>
    %c4_104 = arith.constant 4 : index
    %c0_105 = arith.constant 0 : index
    %c0_106 = arith.constant 0 : index
    %169 = vector.load %arg5[%c4_104, %c0_105, %c0_106] : memref<7x16x1xf32, #tpu.memory_space<vmem>>, vector<1x16x1xf32>
    %170 = vector.shape_cast %169 : vector<1x16x1xf32> to vector<16x1xf32>
    %171 = vector.broadcast %170 : vector<16x1xf32> to vector<16x128xf32>
    %172 = arith.addf %168, %171 : vector<16x128xf32>
    %173 = vector.extract_strided_slice %172 {offsets = [0, 0], sizes = [8, 128], strides = [1, 1]} : vector<16x128xf32> to vector<8x128xf32>
    %174 = arith.addf %139, %173 : vector<8x128xf32>
    %175 = vector.extract_strided_slice %172 {offsets = [8, 0], sizes = [8, 128], strides = [1, 1]} : vector<16x128xf32> to vector<8x128xf32>
    %176 = arith.addf %141, %175 : vector<8x128xf32>
    %177 = arith.truncf %176 : vector<8x128xf32> to vector<8x128xbf16>
    %c5 = arith.constant 5 : index
    %c0_107 = arith.constant 0 : index
    %c0_108 = arith.constant 0 : index
    %178 = vector.load %arg1[%c5, %c0_107, %c0_108] : memref<7x128x128xbf16, #tpu.memory_space<vmem>>, vector<1x128x128xbf16>
    %179 = vector.shape_cast %178 : vector<1x128x128xbf16> to vector<128x128xbf16>
    %cst_109 = arith.constant dense<0.000000e+00> : vector<8x128xf32>
    %180 = tpu.matmul %177, %179, %cst_109 {dimension_numbers = #tpu.dot_dimension_numbers<[1], [0], [0], [1], [0, 0, 1, 1], [], []>} : vector<8x128xbf16>, vector<128x128xbf16>, vector<8x128xf32> -> vector<8x128xf32>
    %181 = arith.truncf %180 : vector<8x128xf32> to vector<8x128xbf16>
    %182 = tpu.concatenate %181, %177 in 0 : vector<8x128xbf16>, vector<8x128xbf16> -> vector<16x128xbf16>
    %c5_110 = arith.constant 5 : index
    %c0_111 = arith.constant 0 : index
    %c0_112 = arith.constant 0 : index
    %183 = vector.load %arg2[%c5_110, %c0_111, %c0_112] : memref<7x64x16xbf16, #tpu.memory_space<vmem>>, vector<1x64x16xbf16>
    %184 = vector.shape_cast %183 : vector<1x64x16xbf16> to vector<64x16xbf16>
    %cst_113 = arith.constant dense<0.000000e+00> : vector<64x128xf32>
    %185 = tpu.matmul %184, %182, %cst_113 {dimension_numbers = #tpu.dot_dimension_numbers<[1], [0], [0], [1], [0, 0, 1, 1], [], []>} : vector<64x16xbf16>, vector<16x128xbf16>, vector<64x128xf32> -> vector<64x128xf32>
    %c5_114 = arith.constant 5 : index
    %c0_115 = arith.constant 0 : index
    %c0_116 = arith.constant 0 : index
    %186 = vector.load %arg3[%c5_114, %c0_115, %c0_116] : memref<7x64x1xf32, #tpu.memory_space<vmem>>, vector<1x64x1xf32>
    %187 = vector.shape_cast %186 : vector<1x64x1xf32> to vector<64x1xf32>
    %188 = vector.broadcast %187 : vector<64x1xf32> to vector<64x128xf32>
    %189 = arith.addf %185, %188 : vector<64x128xf32>
    %cst_117 = arith.constant 0.000000e+00 : f32
    %190 = vector.broadcast %cst_117 : f32 to vector<64x128xf32>
    %191 = arith.cmpf ogt, %189, %190 : vector<64x128xf32>
    %192 = math.exp %189 : vector<64x128xf32>
    %cst_118 = arith.constant 1.000000e+00 : f32
    %193 = vector.broadcast %cst_118 : f32 to vector<64x128xf32>
    %194 = arith.subf %192, %193 : vector<64x128xf32>
    %cst_119 = arith.constant 1.67326319 : f32
    %195 = vector.broadcast %cst_119 : f32 to vector<64x128xf32>
    %196 = arith.mulf %195, %194 : vector<64x128xf32>
    %197 = arith.select %191, %189, %196 : vector<64x128xi1>, vector<64x128xf32>
    %cst_120 = arith.constant 1.05070102 : f32
    %198 = vector.broadcast %cst_120 : f32 to vector<64x128xf32>
    %199 = arith.mulf %198, %197 : vector<64x128xf32>
    %c5_121 = arith.constant 5 : index
    %c0_122 = arith.constant 0 : index
    %c0_123 = arith.constant 0 : index
    %200 = vector.load %arg4[%c5_121, %c0_122, %c0_123] : memref<7x16x64xbf16, #tpu.memory_space<vmem>>, vector<1x16x64xbf16>
    %201 = vector.shape_cast %200 : vector<1x16x64xbf16> to vector<16x64xbf16>
    %202 = arith.truncf %199 : vector<64x128xf32> to vector<64x128xbf16>
    %cst_124 = arith.constant dense<0.000000e+00> : vector<16x128xf32>
    %203 = tpu.matmul %201, %202, %cst_124 {dimension_numbers = #tpu.dot_dimension_numbers<[1], [0], [0], [1], [0, 0, 1, 1], [], []>} : vector<16x64xbf16>, vector<64x128xbf16>, vector<16x128xf32> -> vector<16x128xf32>
    %c5_125 = arith.constant 5 : index
    %c0_126 = arith.constant 0 : index
    %c0_127 = arith.constant 0 : index
    %204 = vector.load %arg5[%c5_125, %c0_126, %c0_127] : memref<7x16x1xf32, #tpu.memory_space<vmem>>, vector<1x16x1xf32>
    %205 = vector.shape_cast %204 : vector<1x16x1xf32> to vector<16x1xf32>
    %206 = vector.broadcast %205 : vector<16x1xf32> to vector<16x128xf32>
    %207 = arith.addf %203, %206 : vector<16x128xf32>
    %208 = vector.extract_strided_slice %207 {offsets = [0, 0], sizes = [8, 128], strides = [1, 1]} : vector<16x128xf32> to vector<8x128xf32>
    %209 = arith.addf %174, %208 : vector<8x128xf32>
    %210 = vector.extract_strided_slice %207 {offsets = [8, 0], sizes = [8, 128], strides = [1, 1]} : vector<16x128xf32> to vector<8x128xf32>
    %211 = arith.addf %176, %210 : vector<8x128xf32>
    %212 = arith.truncf %211 : vector<8x128xf32> to vector<8x128xbf16>
    %c6 = arith.constant 6 : index
    %c0_128 = arith.constant 0 : index
    %c0_129 = arith.constant 0 : index
    %213 = vector.load %arg1[%c6, %c0_128, %c0_129] : memref<7x128x128xbf16, #tpu.memory_space<vmem>>, vector<1x128x128xbf16>
    %214 = vector.shape_cast %213 : vector<1x128x128xbf16> to vector<128x128xbf16>
    %cst_130 = arith.constant dense<0.000000e+00> : vector<8x128xf32>
    %215 = tpu.matmul %212, %214, %cst_130 {dimension_numbers = #tpu.dot_dimension_numbers<[1], [0], [0], [1], [0, 0, 1, 1], [], []>} : vector<8x128xbf16>, vector<128x128xbf16>, vector<8x128xf32> -> vector<8x128xf32>
    %216 = arith.truncf %215 : vector<8x128xf32> to vector<8x128xbf16>
    %217 = tpu.concatenate %216, %212 in 0 : vector<8x128xbf16>, vector<8x128xbf16> -> vector<16x128xbf16>
    %c6_131 = arith.constant 6 : index
    %c0_132 = arith.constant 0 : index
    %c0_133 = arith.constant 0 : index
    %218 = vector.load %arg2[%c6_131, %c0_132, %c0_133] : memref<7x64x16xbf16, #tpu.memory_space<vmem>>, vector<1x64x16xbf16>
    %219 = vector.shape_cast %218 : vector<1x64x16xbf16> to vector<64x16xbf16>
    %cst_134 = arith.constant dense<0.000000e+00> : vector<64x128xf32>
    %220 = tpu.matmul %219, %217, %cst_134 {dimension_numbers = #tpu.dot_dimension_numbers<[1], [0], [0], [1], [0, 0, 1, 1], [], []>} : vector<64x16xbf16>, vector<16x128xbf16>, vector<64x128xf32> -> vector<64x128xf32>
    %c6_135 = arith.constant 6 : index
    %c0_136 = arith.constant 0 : index
    %c0_137 = arith.constant 0 : index
    %221 = vector.load %arg3[%c6_135, %c0_136, %c0_137] : memref<7x64x1xf32, #tpu.memory_space<vmem>>, vector<1x64x1xf32>
    %222 = vector.shape_cast %221 : vector<1x64x1xf32> to vector<64x1xf32>
    %223 = vector.broadcast %222 : vector<64x1xf32> to vector<64x128xf32>
    %224 = arith.addf %220, %223 : vector<64x128xf32>
    %cst_138 = arith.constant 0.000000e+00 : f32
    %225 = vector.broadcast %cst_138 : f32 to vector<64x128xf32>
    %226 = arith.cmpf ogt, %224, %225 : vector<64x128xf32>
    %227 = math.exp %224 : vector<64x128xf32>
    %cst_139 = arith.constant 1.000000e+00 : f32
    %228 = vector.broadcast %cst_139 : f32 to vector<64x128xf32>
    %229 = arith.subf %227, %228 : vector<64x128xf32>
    %cst_140 = arith.constant 1.67326319 : f32
    %230 = vector.broadcast %cst_140 : f32 to vector<64x128xf32>
    %231 = arith.mulf %230, %229 : vector<64x128xf32>
    %232 = arith.select %226, %224, %231 : vector<64x128xi1>, vector<64x128xf32>
    %cst_141 = arith.constant 1.05070102 : f32
    %233 = vector.broadcast %cst_141 : f32 to vector<64x128xf32>
    %234 = arith.mulf %233, %232 : vector<64x128xf32>
    %c6_142 = arith.constant 6 : index
    %c0_143 = arith.constant 0 : index
    %c0_144 = arith.constant 0 : index
    %235 = vector.load %arg4[%c6_142, %c0_143, %c0_144] : memref<7x16x64xbf16, #tpu.memory_space<vmem>>, vector<1x16x64xbf16>
    %236 = vector.shape_cast %235 : vector<1x16x64xbf16> to vector<16x64xbf16>
    %237 = arith.truncf %234 : vector<64x128xf32> to vector<64x128xbf16>
    %cst_145 = arith.constant dense<0.000000e+00> : vector<16x128xf32>
    %238 = tpu.matmul %236, %237, %cst_145 {dimension_numbers = #tpu.dot_dimension_numbers<[1], [0], [0], [1], [0, 0, 1, 1], [], []>} : vector<16x64xbf16>, vector<64x128xbf16>, vector<16x128xf32> -> vector<16x128xf32>
    %c6_146 = arith.constant 6 : index
    %c0_147 = arith.constant 0 : index
    %c0_148 = arith.constant 0 : index
    %239 = vector.load %arg5[%c6_146, %c0_147, %c0_148] : memref<7x16x1xf32, #tpu.memory_space<vmem>>, vector<1x16x1xf32>
    %240 = vector.shape_cast %239 : vector<1x16x1xf32> to vector<16x1xf32>
    %241 = vector.broadcast %240 : vector<16x1xf32> to vector<16x128xf32>
    %242 = arith.addf %238, %241 : vector<16x128xf32>
    %243 = vector.extract_strided_slice %242 {offsets = [0, 0], sizes = [8, 128], strides = [1, 1]} : vector<16x128xf32> to vector<8x128xf32>
    %244 = arith.addf %209, %243 : vector<8x128xf32>
    %cst_149 = arith.constant 0.000000e+00 : f32
    %245 = vector.broadcast %cst_149 : f32 to vector<8x128xf32>
    %246 = arith.maximumf %244, %245 : vector<8x128xf32>
    %247 = arith.truncf %246 : vector<8x128xf32> to vector<8x128xbf16>
    %c0_150 = arith.constant 0 : index
    %c0_151 = arith.constant 0 : index
    %248 = vector.load %arg6[%c0_150, %c0_151] : memref<8x8xbf16, #tpu.memory_space<vmem>>, vector<8x8xbf16>
    %cst_152 = arith.constant dense<0.000000e+00> : vector<8x128xf32>
    %249 = tpu.matmul %248, %247, %cst_152 {dimension_numbers = #tpu.dot_dimension_numbers<[1], [0], [0], [1], [0, 0, 1, 1], [], []>} : vector<8x8xbf16>, vector<8x128xbf16>, vector<8x128xf32> -> vector<8x128xf32>
    %c0_153 = arith.constant 0 : index
    %c0_154 = arith.constant 0 : index
    %250 = vector.load %arg7[%c0_153, %c0_154] : memref<8x1xf32, #tpu.memory_space<vmem>>, vector<8x1xf32>
    %251 = vector.broadcast %250 : vector<8x1xf32> to vector<8x128xf32>
    %252 = arith.addf %249, %251 : vector<8x128xf32>
    %c0_155 = arith.constant 0 : index
    %c0_156 = arith.constant 0 : index
    %253 = vector.load %arg8[%c0_155, %c0_156] : memref<8x128xf32, #tpu.memory_space<vmem>>, vector<8x128xf32>
    tpu.vector_store %arg8[%c0_155, %c0_156], %252 {strides = array<i32>} : memref<8x128xf32, #tpu.memory_space<vmem>>, vector<8x128xf32>,
    return
  }
}

</mosaic_0001>

<bundles_post_ra>
// kernel: tpu_custom_call.1
= control target key start
LH: loop header
LB: loop body
LE: loop exit
PB: predicated region body
PF: predicated region fallthrough
CT: control target
= control target key end

     0   :  { %v4960_v1 = vmov 0.0   ;;  %vm3929_vm0 = vmmov 0   ;;  %v3930_v3 = vmov 0   ;;  %s4951_s0 = inlined_call_operand.vmem [shape: f32[8,128], index: 0, kind: input, shape index: {}]   ;;  %s4952_s1 = inlined_call_operand.vmem [shape: bf16[7,128,128], index: 1, kind: input, shape index: {}]   ;;  %s4953_s2 = inlined_call_operand.vmem [shape: bf16[7,64,16], index: 2, kind: input, shape index: {}]   ;;  %s4954_s3 = inlined_call_operand.vmem [shape: f32[7,64,1], index: 3, kind: input, shape index: {}]   ;;  %s4955_s4 = inlined_call_operand.vmem [shape: bf16[7,16,64], index: 4, kind: input, shape index: {}]   ;;  %s4956_s5 = inlined_call_operand.vmem [shape: f32[7,16,1], index: 5, kind: input, shape index: {}]   ;;  %s4957_s6 = inlined_call_operand.vmem [shape: bf16[8,8], index: 6, kind: input, shape index: {}]   ;;  %s4958_s7 = inlined_call_operand.vmem [shape: f32[8,1], index: 7, kind: input, shape index: {}]   ;;  %s4959_s8 = inlined_call_operand.hbm [shape: f32[8,128], index: 8, kind: output, shape index: {}]  }
   0x1   :  { %v3703_v0 = vld [vmem:[%s4952_s1 + $0x38] sm:$0xff]   ;;  %3397 = vmatprep.subr.bf16.mxu0 %v4960_v1  ;;  %v3704_v2 = vld [vmem:[%s4952_s1 + $0x30] sm:$0xff]   ;;  %3413 = vmatprep.mubr.msk.bf16.mxu0 %vm3929_vm0, %v4960_v1  ;;  %v3705_v4 = vld [vmem:[%s4952_s1 + $0x28] sm:$0xff]  }
   0x2   :  { %3398 = vmatpush3.bf16.msra.mxu0 %v3703_v0  ;;  %3701 = vset.pattern.permute.xlu0 %v3930_v3  ;;  %v159_v5 = vld [vmem:[%s4954_s3 + $0x30] sm:$0xff]  ;;  %v157_v6 = vld [vmem:[%s4954_s3 + $0x20] sm:$0xff]  ;;  %v160_v8 = vld [vmem:[%s4954_s3 + $0x38] sm:$0xff] }
   0x3   :  { %3399 = vmatprep.subr.bf16.mxu0 %v4960_v1  ;;  %3702 = vset.pattern.permute.xlu1 %v3930_v3  ;;  %v3706_v7 = vld [vmem:[%s4952_s1 + $0x20] sm:$0xff]   ;;  %v158_v9 = vld [vmem:[%s4954_s3 + $0x28] sm:$0xff]  ;;  %v3707_v10 = vld [vmem:[%s4952_s1 + $0x18] sm:$0xff]  }
   0x4   :  { %193 = vperm.xlu0 %3701, %v159_v5   ;;  %183 = vperm.xlu1 %3702, %v157_v6   ;;  %v155_v11 = vld [vmem:[%s4954_s3 + $0x10] sm:$0xff]  ;;  %v156_v12 = vld [vmem:[%s4954_s3 + $0x18] sm:$0xff]  ;;  %v153_v14 = vld [vmem:[%s4954_s3] sm:$0xff] }
   0x5   :  { %v3708_v13 = vld [vmem:[%s4952_s1 + $0x10] sm:$0xff]   ;;  %v154_v15 = vld [vmem:[%s4954_s3 + $0x8] sm:$0xff]  ;;  %v3710_v19 = vld [vmem:[%s4952_s1] sm:$0xff]  }
   0x6   :  { %3400 = vmatpush3.bf16.msra.mxu0 %v3704_v2  ;;  %v3709_v16 = vld [vmem:[%s4952_s1 + $0x8] sm:$0xff]   ;;  %v2927_v18 = vld [vmem:[%s4954_s3 + $0x70] sm:$0xff]  ;;  %v4043_v20 = vld [vmem:[%s4951_s0] sm:$0xff] }
   0x7   :  { %3401 = vmatprep.subr.bf16.mxu0 %v4960_v1  ;;  %v362_v17 = vld [vmem:[%s4956_s5 + $0x8] sm:$0xff]  ;;  %v2928_v21 = vld [vmem:[%s4954_s3 + $0x78] sm:$0xff]  ;;  %v2925_v22 = vld [vmem:[%s4954_s3 + $0x60] sm:$0xff]  ;;  %v4057_v24 = vpack.c.bf16 %v4043_v20, %v4043_v20 }
   0x8   :  { %198 = vperm.xlu0 %3701, %v160_v8   ;;  %188 = vperm.xlu1 %3702, %v158_v9   ;;  %v2926_v23 = vld [vmem:[%s4954_s3 + $0x68] sm:$0xff]  ;;  %v2923_v25 = vld [vmem:[%s4954_s3 + $0x50] sm:$0xff]  ;;  %v2924_v26 = vld [vmem:[%s4954_s3 + $0x58] sm:$0xff] }
   0x9   :  { %v2921_v27 = vld [vmem:[%s4954_s3 + $0x40] sm:$0xff]  ;;  %v2922_v28 = vld [vmem:[%s4954_s3 + $0x48] sm:$0xff]  ;;  %v2948_v29 = vld [vmem:[%s4956_s5 + $0x18] sm:$0xff] }
   0xa   :  { %3402 = vmatpush3.bf16.msra.mxu0 %v3705_v4  ;;  %v2989_v30 = vld [vmem:[%s4954_s3 + $0xb0] sm:$0xff]  ;;  %v2990_v31 = vld [vmem:[%s4954_s3 + $0xb8] sm:$0xff]  ;;  %v2987_v32 = vld [vmem:[%s4954_s3 + $0xa0] sm:$0xff] }
   0xb   :  { %3403 = vmatprep.subr.bf16.mxu0 %v4960_v1  ;;  %v2988_v33 = vld [vmem:[%s4954_s3 + $0xa8] sm:$0xff]  ;;  %v2985_v34 = vld [vmem:[%s4954_s3 + $0x90] sm:$0xff]  ;;  %v2986_v35 = vld [vmem:[%s4954_s3 + $0x98] sm:$0xff] }
   0xc   :  { %173 = vperm.xlu0 %3701, %v155_v11   ;;  %178 = vperm.xlu1 %3702, %v156_v12   ;;  %v2983_v36 = vld [vmem:[%s4954_s3 + $0x80] sm:$0xff] }
   0xe   :  { %3404 = vmatpush3.bf16.msra.mxu0 %v3706_v7 }
   0xf   :  { %3405 = vmatprep.subr.bf16.mxu0 %v4960_v1 }
  0x10   :  { %163 = vperm.xlu0 %3701, %v153_v14   ;;  %168 = vperm.xlu1 %3702, %v154_v15  }
  0x12   :  { %3406 = vmatpush3.bf16.msra.mxu0 %v3707_v10 }
  0x13   :  { %3407 = vmatprep.subr.bf16.mxu0 %v4960_v1 }
  0x14   :  { %370 = vperm.xlu0 %3701, %v362_v17   ;;  %588 = vperm.xlu1 %3702, %v2927_v18  }
  0x16   :  { %3408 = vmatpush3.bf16.msra.mxu0 %v3708_v13 }
  0x17   :  { %3409 = vmatprep.subr.bf16.mxu0 %v4960_v1 }
  0x18   :  { %593 = vperm.xlu0 %3701, %v2928_v21   ;;  %578 = vperm.xlu1 %3702, %v2925_v22  }
  0x1a   :  { %3410 = vmatpush3.bf16.msra.mxu0 %v3709_v16 }
  0x1b   :  { %3411 = vmatprep.subr.bf16.mxu0 %v4960_v1 }
  0x1c   :  { %583 = vperm.xlu0 %3701, %v2926_v23   ;;  %568 = vperm.xlu1 %3702, %v2923_v25  }
  0x1e   :  { %3412 = vmatpush3.bf16.msra.mxu0 %v3710_v19 }
  0x20   :  { %573 = vperm.xlu0 %3701, %v2924_v26   ;;  %558 = vperm.xlu1 %3702, %v2921_v27  }
  0x21   :  { %3414 = vmatmul.mubr.bf16.vlgmr.msra.gmra.mxu0 %v4057_v24 }
  0x24   :  { %563 = vperm.xlu0 %3701, %v2922_v28   ;;  %766 = vperm.xlu1 %3702, %v2948_v29  }
  0x28   :  { %983 = vperm.xlu0 %3701, %v2989_v30   ;;  %988 = vperm.xlu1 %3702, %v2990_v31  }
  0x2c   :  { %973 = vperm.xlu0 %3701, %v2987_v32   ;;  %978 = vperm.xlu1 %3702, %v2988_v33  }
  0x30   :  { %963 = vperm.xlu0 %3701, %v2985_v34   ;;  %968 = vperm.xlu1 %3702, %v2986_v35  }
  0x34   :  { %953 = vperm.xlu0 %3701, %v2983_v36  }
  0x35   :  { %13 = vsyncpa [#allocation3], 0  ;;  %v2984_v37 = vld [vmem:[%s4954_s3 + $0x88] sm:$0xff]  ;;  %v3051_v39 = vld [vmem:[%s4954_s3 + $0xf0] sm:$0xff]  ;;  %vm221_vm1 = vcmask 130048   ;;  %v139_v21 = vrot.slane %v4057_v24, 4 }
  0x36   :  { %v3010_v38 = vld [vmem:[%s4956_s5 + $0x28] sm:$0xff]  ;;  %958 = vperm.xlu1 %3702, %v2984_v37   ;;  %v3052_v40 = vld [vmem:[%s4954_s3 + $0xf8] sm:$0xff]  ;;  %v3711_v41 = vld [vmem:[%s4953_s2] sm:$0xff]   ;;  %vm140_vm2 = vcmask 1043456   ;;  %vm378_vm11 = vcmask 523264   ;;  %s3931_s9 = smov [#allocation2]  }
  0x37   :  { %3419 = vmatprep.mubr.msk.bf16.mxu1 %vm221_vm1, %v3711_v41  ;;  %v3049_v42 = vld [vmem:[%s4954_s3 + $0xe0] sm:$0xff]  ;;  %v3050_v43 = vld [vmem:[%s4954_s3 + $0xe8] sm:$0xff]  ;;  %v3047_v44 = vld [vmem:[%s4954_s3 + $0xd0] sm:$0xff]  ;;  %s2855_s10 = sshll.u32 %s3931_s9, 4  ;;  %s2856_s10 = int_to_ptr.vmem [resolvable:$true] %s2855_s10 }
  0x38   :  { %1161 = vperm.xlu0 %3701, %v3010_v38   ;;  %v3048_v45 = vld [vmem:[%s4954_s3 + $0xd8] sm:$0xff]  ;;  %v3045_v46 = vld [vmem:[%s4954_s3 + $0xc0] sm:$0xff]  ;;  %v3046_v47 = vld [vmem:[%s4954_s3 + $0xc8] sm:$0xff]  ;;  %s3906_s11 = scalar_lea.vmem %s2856_s10, 128  ;;  %p3911_p1 = scmp.lt.s32.totalorder %s2856_s10, %s2856_s10 }
  0x39   :  { %v3072_v48 = vld [vmem:[%s4956_s5 + $0x38] sm:$0xff]  ;;  %v3113_v49 = vld [vmem:[%s4954_s3 + $0x130] sm:$0xff]  ;;  %v3111_v51 = vld [vmem:[%s4954_s3 + $0x120] sm:$0xff]  ;;  %p3907_p0 = scmp.ne.s32.totalorder %s2856_s10, %s3906_s11  ;;  %p3912_p2 = scmp.lt.s32.totalorder %s3906_s11, %s3906_s11 }
  0x3a   :  { %1378 = vperm.xlu1 %3702, %v3051_v39   ;;  %v3114_v50 = vld [vmem:[%s4954_s3 + $0x138] sm:$0xff]  ;;  %v3112_v52 = vld [vmem:[%s4954_s3 + $0x128] sm:$0xff]  ;;  %v3109_v53 = vld [vmem:[%s4954_s3 + $0x110] sm:$0xff] }
  0x3b   :  { %v3110_v54 = vld [vmem:[%s4954_s3 + $0x118] sm:$0xff]  ;;  %v3107_v55 = vld [vmem:[%s4954_s3 + $0x100] sm:$0xff]  ;;  %v3108_v56 = vld [vmem:[%s4954_s3 + $0x108] sm:$0xff]  ;;  %p3913_p3 = por %p3912_p2, %p3911_p1 }
  0x3c   :  { %1383 = vperm.xlu0 %3701, %v3052_v40   ;;  %v3134_v57 = vld [vmem:[%s4956_s5 + $0x48] sm:$0xff]  ;;  %v3175_v58 = vld [vmem:[%s4954_s3 + $0x170] sm:$0xff]  ;;  %v3176_v59 = vld [vmem:[%s4954_s3 + $0x178] sm:$0xff] }
  0x3d   :  { %v3173_v60 = vld [vmem:[%s4954_s3 + $0x160] sm:$0xff]  ;;  %v3174_v61 = vld [vmem:[%s4954_s3 + $0x168] sm:$0xff]  ;;  %v3171_v62 = vld [vmem:[%s4954_s3 + $0x150] sm:$0xff]  ;;  %p3914_p4 = pnand %p3913_p3, %p3907_p0 }
  0x3e   :  { %1368 = vperm.xlu1 %3702, %v3049_v42   ;;  %v3172_v63 = vld [vmem:[%s4954_s3 + $0x158] sm:$0xff]  ;;  %v3169_v0 = vld [vmem:[%s4954_s3 + $0x140] sm:$0xff]  ;;  %v3170_v2 = vld [vmem:[%s4954_s3 + $0x148] sm:$0xff] }
  0x3f   :  { %v3196_v3 = vld [vmem:[%s4956_s5 + $0x58] sm:$0xff]  ;;  %v3237_v4 = vld [vmem:[%s4954_s3 + $0x1b0] sm:$0xff]  ;;  %v3235_v6 = vld [vmem:[%s4954_s3 + $0x1a0] sm:$0xff] }
  0x40   :  { %1373 = vperm.xlu0 %3701, %v3050_v43   ;;  %v3238_v5 = vld [vmem:[%s4954_s3 + $0x1b8] sm:$0xff]  ;;  %v3236_v7 = vld [vmem:[%s4954_s3 + $0x1a8] sm:$0xff]  ;;  %v3233_v8 = vld [vmem:[%s4954_s3 + $0x190] sm:$0xff] }
  0x41   :  { %v3234_v9 = vld [vmem:[%s4954_s3 + $0x198] sm:$0xff]  ;;  %v3231_v10 = vld [vmem:[%s4954_s3 + $0x180] sm:$0xff]  ;;  %v3232_v11 = vld [vmem:[%s4954_s3 + $0x188] sm:$0xff] }
  0x42   :  { %1358 = vperm.xlu1 %3702, %v3047_v44   ;;  %v361_v12 = vld [vmem:[%s4956_s5] sm:$0xff]  ;;  %v2947_v13 = vld [vmem:[%s4956_s5 + $0x10] sm:$0xff]  ;;  %v3712_v28 = vld [vmem:[%s4953_s2 + $0x8] sm:$0xff]  }
  0x43   :  { %v3009_v14 = vld [vmem:[%s4956_s5 + $0x20] sm:$0xff]  ;;  %v3071_v15 = vld [vmem:[%s4956_s5 + $0x30] sm:$0xff]  ;;  %v3714_v24 = vld [vmem:[%s4953_s2 + $0x18] sm:$0xff]  }
  0x44   :  { %1363 = vperm.xlu0 %3701, %v3048_v45   ;;  %v3133_v16 = vld [vmem:[%s4956_s5 + $0x40] sm:$0xff]  ;;  %v3195_v17 = vld [vmem:[%s4956_s5 + $0x50] sm:$0xff] }
  0x45   :  { %v3257_v18 = vld [vmem:[%s4956_s5 + $0x60] sm:$0xff]  ;;  %v3713_v29 = vld [vmem:[%s4953_s2 + $0x10] sm:$0xff]  }
  0x46   :  { %1348 = vperm.xlu1 %3702, %v3045_v46   ;;  %v2795_v19 = vld [vmem:[%s4958_s7] sm:$0xff] }
  0x48   :  { %1353 = vperm.xlu0 %3701, %v3046_v47  }
  0x4a   :  { %1556 = vperm.xlu1 %3702, %v3072_v48  }
  0x4c   :  { %1773 = vperm.xlu0 %3701, %v3113_v49  }
  0x4e   :  { %1778 = vperm.xlu1 %3702, %v3114_v50  }
  0x50   :  { %1763 = vperm.xlu0 %3701, %v3111_v51  }
  0x52   :  { %1768 = vperm.xlu1 %3702, %v3112_v52  }
  0x54   :  { %1753 = vperm.xlu0 %3701, %v3109_v53  }
  0x56   :  { %1758 = vperm.xlu1 %3702, %v3110_v54  }
  0x58   :  { %1743 = vperm.xlu0 %3701, %v3107_v55  }
  0x5a   :  { %1748 = vperm.xlu1 %3702, %v3108_v56  }
  0x5c   :  { %1951 = vperm.xlu0 %3701, %v3134_v57  }
  0x5e   :  { %2168 = vperm.xlu1 %3702, %v3175_v58  }
  0x60   :  { %2173 = vperm.xlu0 %3701, %v3176_v59  }
  0x62   :  { %2158 = vperm.xlu1 %3702, %v3173_v60  }
  0x64   :  { %2163 = vperm.xlu0 %3701, %v3174_v61  }
  0x66   :  { %2148 = vperm.xlu1 %3702, %v3171_v62  }
  0x68   :  { %2153 = vperm.xlu0 %3701, %v3172_v63  }
  0x6a   :  { %2138 = vperm.xlu1 %3702, %v3169_v0  }
  0x6c   :  { %2143 = vperm.xlu0 %3701, %v3170_v2  }
  0x6e   :  { %2346 = vperm.xlu1 %3702, %v3196_v3  }
  0x70   :  { %2563 = vperm.xlu0 %3701, %v3237_v4  }
  0x72   :  { %2568 = vperm.xlu1 %3702, %v3238_v5  }
  0x74   :  { %2553 = vperm.xlu0 %3701, %v3235_v6  }
  0x76   :  { %2558 = vperm.xlu1 %3702, %v3236_v7  }
  0x78   :  { %2543 = vperm.xlu0 %3701, %v3233_v8  }
  0x7a   :  { %2548 = vperm.xlu1 %3702, %v3234_v9  }
  0x7c   :  { %2533 = vperm.xlu0 %3701, %v3231_v10  }
  0x7e   :  { %2538 = vperm.xlu1 %3702, %v3232_v11  }
  0x7f   :  { %v184_v31 = vpop.permute.xlu1 %183  ;;  %v194_v32 = vpop.permute.xlu0 %193 }
  0x80   :  { %365 = vperm.xlu0 %3701, %v361_v12  }
  0x82   :  { %761 = vperm.xlu1 %3702, %v2947_v13  }
  0x83   :  { %v189_v33 = vpop.permute.xlu1 %188  ;;  %v199_v34 = vpop.permute.xlu0 %198 }
  0x84   :  { %1156 = vperm.xlu0 %3701, %v3009_v14  }
  0x86   :  { %1551 = vperm.xlu1 %3702, %v3071_v15  }
  0x87   :  { %v179_v37 = vpop.permute.xlu1 %178  ;;  %v174_v39 = vpop.permute.xlu0 %173 }
  0x88   :  { %1946 = vperm.xlu0 %3701, %v3133_v16  }
  0x8a   :  { %2341 = vperm.xlu1 %3702, %v3195_v17  }
  0x8b   :  { %v169_v44 = vpop.permute.xlu1 %168  ;;  %v164_v51 = vpop.permute.xlu0 %163 }
  0x8c   :  { %2736 = vperm.xlu0 %3701, %v3257_v18  }
  0x8e   :  { %2798 = vperm.xlu1 %3702, %v2795_v19  }
  0xe1   :  { %v131_v22 = vpop.f32.mrf.mxu0 }
  0xe2   :  { %v137_v23 = vpack.c.bf16 %v131_v22, %v131_v22 }
  0xe3   :  { %v3415_v25 = vpop.f32.mrf.mxu0 }
  0xe4   :  { %v143_v26 = vsel %vm140_vm2, %v137_v23, %v139_v21 }
  0xe5   :  { %v134_v27 = vpop.f32.mrf.mxu0  ;;  %3417 = vmatprep.subr.bf16.mxu1 %v143_v26 }
  0xe6   :  { %3418 = vmatpush3.bf16.msra.mxu1 %v143_v26 }
  0xe7   :  { %v3416_v30 = vpop.f32.mrf.mxu0  ;;  %3427 = vmatprep.subr.bf16.mxu1 %v4960_v1 }
  0xe9   :  { %3420 = vmatmul.mubr.msk.bf16.vlgmr.msra.gmra.mxu1 %vm221_vm1, %v3712_v28 }
  0xea   :  { %3423 = vmatprep.mubr.msk.bf16.mxu1 %vm221_vm1, %v3713_v29 }
  0xf1   :  { %3424 = vmatmul.mubr.msk.bf16.gmra.mxu1 %vm221_vm1, %v3714_v24 }
  0xf2   :  { %3435 = vmatprep.mubr.msk.bf16.mxu1 %vm3929_vm0, %v4960_v1 }
 0x1a9   :  { %v3421_v35 = vpop.f32.mrf.mxu1 }
 0x1aa   :  { %v4254_v42 = vadd.f32 %v3421_v35, %v174_v39 }
 0x1ab   :  { %v268_v36 = vpop.f32.mrf.mxu1 }
 0x1ac   :  { %v311_v52 = vmul.f32 1.442695, %v4254_v42  ;;  %v4260_v54 = vadd.f32 %v268_v36, %v164_v51  ;;  %vm301_vm8 = vcmp.gt.f32.partialorder %v4254_v42, 0.0  ;;  %v3721_v51 = vld [vmem:[%s4952_s1 + $0x50] sm:$0xff]  }
 0x1ad   :  { %v3422_v38 = vpop.f32.mrf.mxu1 }
 0x1ae   :  { %v4252_v40 = vadd.f32 %v3422_v38, %v179_v37  ;;  %v307_v61 = vmul.f32 1.442695, %v4260_v54  ;;  %vm299_vm10 = vcmp.gt.f32.partialorder %v4260_v54, 0.0 }
 0x1af   :  { %v271_v41 = vpop.f32.mrf.mxu1 }
 0x1b0   :  { %v313_v46 = vmul.f32 1.442695, %v4252_v40  ;;  %v4257_v47 = vadd.f32 %v271_v41, %v169_v44  ;;  %vm302_vm7 = vcmp.gt.f32.partialorder %v4252_v40, 0.0 }
 0x1b1   :  { %v3425_v43 = vpop.f32.mrf.mxu1 }
 0x1b2   :  { %v293_v45 = vadd.f32 %v3425_v43, %v194_v32  ;;  %v309_v57 = vmul.f32 1.442695, %v4257_v47  ;;  %vm300_vm9 = vcmp.gt.f32.partialorder %v4257_v47, 0.0 }
 0x1b3   :  { %v284_v48 = vpop.f32.mrf.mxu1 }
 0x1b4   :  { %v319_v49 = vmul.f32 1.442695, %v293_v45  ;;  %v285_v50 = vadd.f32 %v284_v48, %v184_v31  ;;  %vm305_vm3 = vcmp.gt.f32.partialorder %v293_v45, 0.0  ;;  %v3718_v48 = vld [vmem:[%s4952_s1 + $0x68] sm:$0xff]  }
 0x1b5   :  { %v3426_v53 = vpop.f32.mrf.mxu1 }
 0x1b6   :  { %3794 = vpow2.f32 %v319_v49  ;;  %v315_v55 = vmul.f32 1.442695, %v285_v50  ;;  %v296_v56 = vadd.f32 %v3426_v53, %v199_v34  ;;  %vm303_vm5 = vcmp.gt.f32.partialorder %v285_v50, 0.0  ;;  %v3719_v49 = vld [vmem:[%s4952_s1 + $0x60] sm:$0xff]  }
 0x1b7   :  { %3796 = vpow2.f32 %v313_v46  ;;  %v287_v58 = vpop.f32.mrf.mxu1  ;;  %v3716_v46 = vld [vmem:[%s4952_s1 + $0x78] sm:$0xff]   ;;  %v3723_v53 = vld [vmem:[%s4952_s1 + $0x40] sm:$0xff]  }
 0x1b8   :  { %3798 = vpow2.f32 %v315_v55  ;;  %v321_v59 = vmul.f32 1.442695, %v296_v56  ;;  %v288_v60 = vadd.f32 %v287_v58, %v189_v33  ;;  %vm306_vm4 = vcmp.gt.f32.partialorder %v296_v56, 0.0 }
 0x1b9   :  { %3800 = vpow2.f32 %v311_v52  ;;  %v3722_v52 = vld [vmem:[%s4952_s1 + $0x48] sm:$0xff]  }
 0x1ba   :  { %3802 = vpow2.f32 %v321_v59  ;;  %v317_v62 = vmul.f32 1.442695, %v288_v60  ;;  %vm304_vm6 = vcmp.gt.f32.partialorder %v288_v60, 0.0 }
 0x1bb   :  { %3804 = vpow2.f32 %v309_v57 }
 0x1bc   :  { %3806 = vpow2.f32 %v317_v62  ;;  %v3724_v62 = vld [vmem:[%s4953_s2 + $0x20] sm:$0xff]  }
 0x1bd   :  { %3808 = vpow2.f32 %v307_v61  ;;  %3461 = vmatprep.mubr.msk.bf16.mxu0 %vm221_vm1, %v3724_v62 }
 0x1c3   :  { %v3795_v63 = vpop.eup %3794 }
 0x1c4   :  { %v3797_v0 = vpop.eup %3796  ;;  %v2885_v2 = vadd.f32 -1.0, %v3795_v63 }
 0x1c5   :  { %v3799_v3 = vpop.eup %3798  ;;  %v2882_v9 = vadd.f32 -1.0, %v3797_v0 }
 0x1c6   :  { %v3801_v4 = vpop.eup %3800  ;;  %v337_v5 = vmul.f32 1.6732632, %v2885_v2  ;;  %v2883_v6 = vadd.f32 -1.0, %v3799_v3 }
 0x1c7   :  { %v3803_v7 = vpop.eup %3802  ;;  %v2881_v12 = vadd.f32 -1.0, %v3801_v4  ;;  %v334_v18 = vmul.f32 1.6732632, %v2882_v9  ;;  %v3729_v9 = vld [vmem:[%s4952_s1 + $0xb8] sm:$0xff]  }
 0x1c8   :  { %v3805_v8 = vpop.eup %3804  ;;  %v2886_v10 = vadd.f32 -1.0, %v3803_v7  ;;  %v345_v13 = vsel %vm305_vm3, %v293_v45, %v337_v5  ;;  %v335_v14 = vmul.f32 1.6732632, %v2883_v6  ;;  %v3715_v45 = vld [vmem:[%s4955_s4] sm:$0xff]   ;;  %v3725_v5 = vld [vmem:[%s4953_s2 + $0x28] sm:$0xff]   ;;  %v3726_v6 = vld [vmem:[%s4953_s2 + $0x30] sm:$0xff]  }
 0x1c9   :  { %v3807_v11 = vpop.eup %3806  ;;  %v2880_v19 = vadd.f32 -1.0, %v3805_v8  ;;  %v353_v23 = vmul.f32 1.050701, %v345_v13  ;;  %v333_v26 = vmul.f32 1.6732632, %v2881_v12  ;;  %v342_v31 = vsel %vm302_vm7, %v4252_v40, %v334_v18  ;;  %v3727_v8 = vld [vmem:[%s4953_s2 + $0x38] sm:$0xff]  }
 0x1ca   :  { %v338_v15 = vmul.f32 1.6732632, %v2886_v10  ;;  %v2884_v16 = vadd.f32 -1.0, %v3807_v11  ;;  %v3809_v17 = vpop.eup %3808  ;;  %v343_v28 = vsel %vm303_vm5, %v285_v50, %v335_v14  ;;  %v350_v36 = vmul.f32 1.050701, %v342_v31  ;;  %v3720_v50 = vld [vmem:[%s4952_s1 + $0x58] sm:$0xff]  }
 0x1cb   :  { %v2879_v27 = vadd.f32 -1.0, %v3809_v17  ;;  %v332_v32 = vmul.f32 1.6732632, %v2880_v19  ;;  %v351_v33 = vmul.f32 1.050701, %v343_v28  ;;  %v341_v34 = vsel %vm301_vm8, %v4254_v42, %v333_v26  ;;  %v3730_v10 = vld [vmem:[%s4952_s1 + $0xb0] sm:$0xff]  }
 0x1cc   :  { %v346_v21 = vsel %vm306_vm4, %v296_v56, %v338_v15  ;;  %v336_v22 = vmul.f32 1.6732632, %v2884_v16  ;;  %v349_v39 = vmul.f32 1.050701, %v341_v34  ;;  %v371_v56 = vpop.permute.xlu0 %370  ;;  %v3731_v11 = vld [vmem:[%s4952_s1 + $0xa8] sm:$0xff]   ;;  %v3732_v12 = vld [vmem:[%s4952_s1 + $0xa0] sm:$0xff]   ;;  %v589_v15 = vpop.permute.xlu1 %588 }
 0x1cd   :  { %v354_v25 = vmul.f32 1.050701, %v346_v21  ;;  %v331_v35 = vmul.f32 1.6732632, %v2879_v27  ;;  %v340_v38 = vsel %vm300_vm9, %v4257_v47, %v332_v32  ;;  %v3717_v47 = vld [vmem:[%s4952_s1 + $0x70] sm:$0xff]   ;;  %v3733_v13 = vld [vmem:[%s4952_s1 + $0x98] sm:$0xff]  }
 0x1ce   :  { %v344_v29 = vsel %vm304_vm6, %v288_v60, %v336_v22  ;;  %v358_v41 = vpack.c.bf16 %v350_v36, %v349_v39  ;;  %v348_v43 = vmul.f32 1.050701, %v340_v38 }
 0x1cf   :  { %v360_v30 = vpack.c.bf16 %v354_v25, %v353_v23  ;;  %v352_v24 = vmul.f32 1.050701, %v344_v29  ;;  %v339_v40 = vsel %vm299_vm10, %v4260_v54, %v331_v35 }
 0x1d0   :  { %v347_v42 = vmul.f32 1.050701, %v339_v40  ;;  %v594_v14 = vpop.permute.xlu0 %593  ;;  %v579_v17 = vpop.permute.xlu1 %578 }
 0x1d1   :  { %3428 = vmatpush3.bf16.msra.mxu1 %v360_v30  ;;  %v359_v37 = vpack.c.bf16 %v352_v24, %v351_v33 }
 0x1d2   :  { %3429 = vmatprep.subr.bf16.mxu1 %v4960_v1  ;;  %v357_v44 = vpack.c.bf16 %v348_v43, %v347_v42 }
 0x1d4   :  { %v584_v16 = vpop.permute.xlu0 %583  ;;  %v569_v23 = vpop.permute.xlu1 %568 }
 0x1d5   :  { %3430 = vmatpush3.bf16.msra.mxu1 %v359_v37 }
 0x1d6   :  { %3431 = vmatprep.subr.bf16.mxu1 %v4960_v1 }
 0x1d8   :  { %v574_v21 = vpop.permute.xlu0 %573  ;;  %v559_v35 = vpop.permute.xlu1 %558 }
 0x1d9   :  { %3432 = vmatpush3.bf16.msra.mxu1 %v358_v41 }
 0x1da   :  { %3433 = vmatprep.subr.bf16.mxu1 %v4960_v1 }
 0x1dc   :  { %v564_v29 = vpop.permute.xlu0 %563 }
 0x1dd   :  { %3434 = vmatpush3.bf16.msra.mxu1 %v357_v44 }
 0x1de   :  { %3439 = vmatprep.subr.bf16.mxu1 %v4960_v1 }
 0x1e0   :  { %3436 = vmatmul.mubr.msk.bf16.vlgmr.msra.gmra.mxu1 %vm378_vm11, %v3715_v45 }
 0x1e1   :  { %3440 = vmatpush3.bf16.msra.mxu1 %v3716_v46  ;;  %3455 = vmatprep.mubr.msk.bf16.mxu1 %vm3929_vm0, %v4960_v1 }
 0x1e2   :  { %3441 = vmatprep.subr.bf16.mxu1 %v4960_v1 }
 0x1e5   :  { %3442 = vmatpush3.bf16.msra.mxu1 %v3717_v47 }
 0x1e6   :  { %3443 = vmatprep.subr.bf16.mxu1 %v4960_v1 }
 0x1e9   :  { %3444 = vmatpush3.bf16.msra.mxu1 %v3718_v48 }
 0x1ea   :  { %3445 = vmatprep.subr.bf16.mxu1 %v4960_v1 }
 0x1ed   :  { %3446 = vmatpush3.bf16.msra.mxu1 %v3719_v49 }
 0x1ee   :  { %3447 = vmatprep.subr.bf16.mxu1 %v4960_v1 }
 0x1f1   :  { %3448 = vmatpush3.bf16.msra.mxu1 %v3720_v50 }
 0x1f2   :  { %3449 = vmatprep.subr.bf16.mxu1 %v4960_v1 }
 0x1f5   :  { %3450 = vmatpush3.bf16.msra.mxu1 %v3721_v51 }
 0x1f6   :  { %3451 = vmatprep.subr.bf16.mxu1 %v4960_v1 }
 0x1f9   :  { %3452 = vmatpush3.bf16.msra.mxu1 %v3722_v52 }
 0x1fa   :  { %3453 = vmatprep.subr.bf16.mxu1 %v4960_v1 }
 0x1fd   :  { %3454 = vmatpush3.bf16.msra.mxu1 %v3723_v53 }
 0x1fe   :  { %3481 = vmatprep.subr.bf16.mxu1 %v4960_v1 }
 0x2a0   :  { %v4314_v54 = vpop.f32.mrf.mxu1 }
 0x2a2   :  { %v3437_v55 = vpop.f32.mrf.mxu1 }
 0x2a4   :  { %v419_v57 = vpop.f32.mrf.mxu1 }
 0x2a5   :  { %v420_v58 = vadd.f32 %v419_v57, %v371_v56 }
 0x2a6   :  { %v3438_v59 = vpop.f32.mrf.mxu1 }
 0x2a7   :  { %v4317_v60 = vadd.f32 %v420_v58, %v4043_v20 }
 0x2a9   :  { %v425_v61 = vpack.c.bf16 %v4317_v60, %v4317_v60 }
 0x2ab   :  { %3456 = vmatmul.mubr.bf16.vlgmr.msra.gmra.mxu1 %v425_v61  ;;  %v533_v2 = vrot.slane %v425_v61, 4 }
 0x2ac   :  { %3497 = vmatprep.mubr.msk.bf16.mxu1 %vm3929_vm0, %v4960_v1  ;;  %3482 = vmatpush3.bf16.msra.mxu1 %v3729_v9 }
 0x2ad   :  { %3483 = vmatprep.subr.bf16.mxu1 %v4960_v1 }
 0x2b0   :  { %3484 = vmatpush3.bf16.msra.mxu1 %v3730_v10 }
 0x2b1   :  { %3485 = vmatprep.subr.bf16.mxu1 %v4960_v1 }
 0x2b4   :  { %3486 = vmatpush3.bf16.msra.mxu1 %v3731_v11 }
 0x2b5   :  { %3487 = vmatprep.subr.bf16.mxu1 %v4960_v1 }
 0x2b8   :  { %3488 = vmatpush3.bf16.msra.mxu1 %v3732_v12 }
 0x2b9   :  { %3489 = vmatprep.subr.bf16.mxu1 %v4960_v1 }
 0x2bc   :  { %3490 = vmatpush3.bf16.msra.mxu1 %v3733_v13 }
 0x2bd   :  { %3491 = vmatprep.subr.bf16.mxu1 %v4960_v1 }
 0x36b   :  { %v525_v63 = vpop.f32.mrf.mxu1 }
 0x36c   :  { %v531_v0 = vpack.c.bf16 %v525_v63, %v525_v63 }
 0x36d   :  { %v3457_v3 = vpop.f32.mrf.mxu1 }
 0x36e   :  { %v536_v20 = vsel %vm140_vm2, %v531_v0, %v533_v2 }
 0x36f   :  { %v528_v4 = vpop.f32.mrf.mxu1  ;;  %3459 = vmatprep.subr.bf16.mxu0 %v536_v20 }
 0x370   :  { %3460 = vmatpush3.bf16.msra.mxu0 %v536_v20 }
 0x371   :  { %v3458_v7 = vpop.f32.mrf.mxu1  ;;  %3469 = vmatprep.subr.bf16.mxu0 %v4960_v1 }
 0x373   :  { %3462 = vmatmul.mubr.msk.bf16.vlgmr.msra.gmra.mxu0 %vm221_vm1, %v3725_v5 }
 0x374   :  { %3465 = vmatprep.mubr.msk.bf16.mxu0 %vm221_vm1, %v3726_v6 }
 0x37b   :  { %3466 = vmatmul.mubr.msk.bf16.gmra.mxu0 %vm221_vm1, %v3727_v8 }
 0x37c   :  { %3477 = vmatprep.mubr.msk.bf16.mxu0 %vm3929_vm0, %v4960_v1 }
 0x433   :  { %v3463_v18 = vpop.f32.mrf.mxu0 }
 0x434   :  { %v4365_v27 = vadd.f32 %v3463_v18, %v569_v23 }
 0x435   :  { %v662_v19 = vpop.f32.mrf.mxu0 }
 0x436   :  { %v705_v36 = vmul.f32 1.442695, %v4365_v27  ;;  %v4371_v38 = vadd.f32 %v662_v19, %v559_v35  ;;  %vm695_vm4 = vcmp.gt.f32.partialorder %v4365_v27, 0.0 }
 0x437   :  { %v3464_v22 = vpop.f32.mrf.mxu0 }
 0x438   :  { %v4363_v25 = vadd.f32 %v3464_v22, %v574_v21  ;;  %v701_v45 = vmul.f32 1.442695, %v4371_v38  ;;  %vm693_vm6 = vcmp.gt.f32.partialorder %v4371_v38, 0.0 }
 0x439   :  { %v665_v26 = vpop.f32.mrf.mxu0 }
 0x43a   :  { %v707_v24 = vmul.f32 1.442695, %v4363_v25  ;;  %v4368_v31 = vadd.f32 %v665_v26, %v564_v29  ;;  %vm696_vm3 = vcmp.gt.f32.partialorder %v4363_v25, 0.0 }
 0x43b   :  { %v3467_v28 = vpop.f32.mrf.mxu0 }
 0x43c   :  { %v687_v30 = vadd.f32 %v3467_v28, %v589_v15  ;;  %v703_v41 = vmul.f32 1.442695, %v4368_v31  ;;  %vm694_vm5 = vcmp.gt.f32.partialorder %v4368_v31, 0.0 }
 0x43d   :  { %v678_v32 = vpop.f32.mrf.mxu0 }
 0x43e   :  { %v713_v33 = vmul.f32 1.442695, %v687_v30  ;;  %v679_v34 = vadd.f32 %v678_v32, %v579_v17  ;;  %vm699_vm12 = vcmp.gt.f32.partialorder %v687_v30, 0.0  ;;  %v4390_v32 = vpop.permute.xlu0 %983 }
 0x43f   :  { %v3468_v37 = vpop.f32.mrf.mxu0 }
 0x440   :  { %3810 = vpow2.f32 %v713_v33  ;;  %v709_v39 = vmul.f32 1.442695, %v679_v34  ;;  %v690_v40 = vadd.f32 %v3468_v37, %v594_v14  ;;  %vm697_vm14 = vcmp.gt.f32.partialorder %v679_v34, 0.0  ;;  %v3735_v37 = vld [vmem:[%s4952_s1 + $0x88] sm:$0xff]  }
 0x441   :  { %3812 = vpow2.f32 %v707_v24  ;;  %v681_v43 = vpop.f32.mrf.mxu0  ;;  %v3728_v24 = vld [vmem:[%s4955_s4 + $0x8] sm:$0xff]  }
 0x442   :  { %3814 = vpow2.f32 %v709_v39  ;;  %v715_v42 = vmul.f32 1.442695, %v690_v40  ;;  %v682_v44 = vadd.f32 %v681_v43, %v584_v16  ;;  %vm700_vm13 = vcmp.gt.f32.partialorder %v690_v40, 0.0  ;;  %v4397_v35 = vpop.permute.xlu0 %973 }
 0x443   :  { %3816 = vpow2.f32 %v705_v36 }
 0x444   :  { %3818 = vpow2.f32 %v715_v42  ;;  %v711_v46 = vmul.f32 1.442695, %v682_v44  ;;  %vm698_vm15 = vcmp.gt.f32.partialorder %v682_v44, 0.0 }
 0x445   :  { %3820 = vpow2.f32 %v703_v41 }
 0x446   :  { %3822 = vpow2.f32 %v711_v46  ;;  %v4409_v39 = vpop.permute.xlu0 %963 }
 0x447   :  { %3824 = vpow2.f32 %v701_v45 }
 0x44a   :  { %v4413_v41 = vpop.permute.xlu0 %953 }
 0x44d   :  { %v3811_v47 = vpop.eup %3810 }
 0x44e   :  { %v3813_v48 = vpop.eup %3812  ;;  %v2943_v49 = vadd.f32 -1.0, %v3811_v47  ;;  %v4417_v42 = vpop.permute.xlu0 %1161 }
 0x44f   :  { %v3815_v50 = vpop.eup %3814  ;;  %v2940_v57 = vadd.f32 -1.0, %v3813_v48 }
 0x450   :  { %v3817_v51 = vpop.eup %3816  ;;  %v731_v52 = vmul.f32 1.6732632, %v2943_v49  ;;  %v2941_v53 = vadd.f32 -1.0, %v3815_v50 }
 0x451   :  { %v3819_v55 = vpop.eup %3818  ;;  %v2939_v61 = vadd.f32 -1.0, %v3817_v51  ;;  %v728_v20 = vmul.f32 1.6732632, %v2940_v57 }
 0x452   :  { %v3821_v56 = vpop.eup %3820  ;;  %v2944_v58 = vadd.f32 -1.0, %v3819_v55  ;;  %v739_v62 = vsel %vm699_vm12, %v687_v30, %v731_v52  ;;  %v729_v63 = vmul.f32 1.6732632, %v2941_v53  ;;  %v4421_v45 = vpop.permute.xlu0 %1383 }
 0x453   :  { %v3823_v59 = vpop.eup %3822  ;;  %v2938_v4 = vadd.f32 -1.0, %v3821_v56  ;;  %v747_v7 = vmul.f32 1.050701, %v739_v62  ;;  %v727_v9 = vmul.f32 1.6732632, %v2939_v61  ;;  %v736_v15 = vsel %vm696_vm3, %v4363_v25, %v728_v20 }
 0x454   :  { %v732_v0 = vmul.f32 1.6732632, %v2944_v58  ;;  %v2942_v2 = vadd.f32 -1.0, %v3823_v59  ;;  %v3825_v3 = vpop.eup %3824  ;;  %v737_v11 = vsel %vm697_vm14, %v679_v34, %v729_v63  ;;  %v744_v21 = vmul.f32 1.050701, %v736_v15  ;;  %v3734_v34 = vld [vmem:[%s4952_s1 + $0x90] sm:$0xff]  }
 0x455   :  { %v2937_v10 = vadd.f32 -1.0, %v3825_v3  ;;  %v726_v16 = vmul.f32 1.6732632, %v2938_v4  ;;  %v745_v17 = vmul.f32 1.050701, %v737_v11  ;;  %v735_v18 = vsel %vm695_vm4, %v4365_v27, %v727_v9  ;;  %3492 = vmatpush3.bf16.msra.mxu1 %v3734_v34 }
 0x456   :  { %v740_v5 = vsel %vm700_vm13, %v690_v40, %v732_v0  ;;  %v730_v6 = vmul.f32 1.6732632, %v2942_v2  ;;  %v743_v26 = vmul.f32 1.050701, %v735_v18  ;;  %3493 = vmatprep.subr.bf16.mxu1 %v4960_v1  ;;  %v4425_v47 = vpop.permute.xlu0 %1373 }
 0x457   :  { %v748_v8 = vmul.f32 1.050701, %v740_v5  ;;  %v725_v19 = vmul.f32 1.6732632, %v2937_v10  ;;  %v734_v23 = vsel %vm694_vm5, %v4368_v31, %v726_v16  ;;  %v767_v31 = vpop.permute.xlu1 %766 }
 0x458   :  { %v738_v12 = vsel %vm698_vm15, %v682_v44, %v730_v6  ;;  %v753_v28 = vpack.c.bf16 %v744_v21, %v743_v26  ;;  %v742_v29 = vmul.f32 1.050701, %v734_v23 }
 0x459   :  { %v755_v13 = vpack.c.bf16 %v748_v8, %v747_v7  ;;  %v746_v14 = vmul.f32 1.050701, %v738_v12  ;;  %v733_v25 = vsel %vm693_vm6, %v4371_v38, %v725_v19  ;;  %3494 = vmatpush3.bf16.msra.mxu1 %v3735_v37  ;;  %v3736_v38 = vld [vmem:[%s4952_s1 + $0x80] sm:$0xff]  }
 0x45a   :  { %v741_v27 = vmul.f32 1.050701, %v733_v25  ;;  %3495 = vmatprep.subr.bf16.mxu1 %v4960_v1  ;;  %v4429_v49 = vpop.permute.xlu0 %1363 }
 0x45b   :  { %3470 = vmatpush3.bf16.msra.mxu0 %v755_v13  ;;  %v754_v22 = vpack.c.bf16 %v746_v14, %v745_v17  ;;  %v4392_v33 = vpop.permute.xlu1 %988 }
 0x45c   :  { %3471 = vmatprep.subr.bf16.mxu0 %v4960_v1  ;;  %v752_v30 = vpack.c.bf16 %v742_v29, %v741_v27 }
 0x45d   :  { %3496 = vmatpush3.bf16.msra.mxu1 %v3736_v38 }
 0x45e   :  { %v4433_v51 = vpop.permute.xlu0 %1353 }
 0x45f   :  { %3472 = vmatpush3.bf16.msra.mxu0 %v754_v22  ;;  %v4400_v36 = vpop.permute.xlu1 %978 }
 0x460   :  { %3473 = vmatprep.subr.bf16.mxu0 %v4960_v1 }
 0x462   :  { %v4437_v53 = vpop.permute.xlu0 %1773 }
 0x463   :  { %3474 = vmatpush3.bf16.msra.mxu0 %v753_v28  ;;  %v4411_v40 = vpop.permute.xlu1 %968 }
 0x464   :  { %3475 = vmatprep.subr.bf16.mxu0 %v4960_v1 }
 0x466   :  { %v4441_v56 = vpop.permute.xlu0 %1763 }
 0x467   :  { %3476 = vmatpush3.bf16.msra.mxu0 %v752_v30  ;;  %v4415_v43 = vpop.permute.xlu1 %958 }
 0x46a   :  { %3478 = vmatmul.mubr.msk.bf16.vlgmr.msra.gmra.mxu0 %vm378_vm11, %v3728_v24  ;;  %v4445_v58 = vpop.permute.xlu0 %1753  ;;  %v3737_v24 = vld [vmem:[%s4953_s2 + $0x40] sm:$0xff]  }
 0x46b   :  { %v4419_v44 = vpop.permute.xlu1 %1378  ;;  %3503 = vmatprep.mubr.msk.bf16.mxu0 %vm221_vm1, %v3737_v24 }
 0x46e   :  { %v4449_v61 = vpop.permute.xlu0 %1743 }
 0x46f   :  { %v4423_v46 = vpop.permute.xlu1 %1368 }
 0x472   :  { %v4453_v63 = vpop.permute.xlu0 %1951 }
 0x473   :  { %v4427_v48 = vpop.permute.xlu1 %1358 }
 0x476   :  { %v4457_v2 = vpop.permute.xlu0 %2173 }
 0x477   :  { %v4431_v50 = vpop.permute.xlu1 %1348 }
 0x47a   :  { %v4461_v20 = vpop.permute.xlu0 %2163 }
 0x47b   :  { %v4435_v52 = vpop.permute.xlu1 %1556 }
 0x47e   :  { %v4465_v5 = vpop.permute.xlu0 %2153 }
 0x47f   :  { %v4439_v55 = vpop.permute.xlu1 %1778 }
 0x482   :  { %v4469_v7 = vpop.permute.xlu0 %2143 }
 0x483   :  { %v4443_v57 = vpop.permute.xlu1 %1768 }
 0x486   :  { %v4473_v9 = vpop.permute.xlu0 %2563 }
 0x487   :  { %v4447_v59 = vpop.permute.xlu1 %1758 }
 0x48a   :  { %v4477_v11 = vpop.permute.xlu0 %2553 }
 0x48b   :  { %v4451_v62 = vpop.permute.xlu1 %1748  ;;  %4963 = vst [vmem:[#allocation6_spill] sm:$0xff] %v4477_v11 }
 0x48e   :  { %v4481_v13 = vpop.permute.xlu0 %2543 }
 0x48f   :  { %v4455_v0 = vpop.permute.xlu1 %2168 }
 0x492   :  { %v4485_v15 = vpop.permute.xlu0 %2533 }
 0x493   :  { %v4459_v3 = vpop.permute.xlu1 %2158  ;;  %4965 = vst [vmem:[#allocation8_spill] sm:$0xff] %v4485_v15 }
 0x496   :  { %v366_v17 = vpop.permute.xlu0 %365 }
 0x497   :  { %v4463_v4 = vpop.permute.xlu1 %2148  ;;  %v417_v21 = vadd.f32 %v4314_v54, %v366_v17 }
 0x49b   :  { %v4467_v6 = vpop.permute.xlu1 %2138 }
 0x49f   :  { %v4471_v8 = vpop.permute.xlu1 %2346 }
 0x4a3   :  { %v4475_v10 = vpop.permute.xlu1 %2568 }
 0x4a4   :  { %4962 = vst [vmem:[#allocation5_spill] sm:$0xff] %v4475_v10 }
 0x4a7   :  { %v4479_v12 = vpop.permute.xlu1 %2558 }
 0x4a8   :  { %4964 = vst [vmem:[#allocation7_spill] sm:$0xff] %v4479_v12 }
 0x4ab   :  { %v4483_v14 = vpop.permute.xlu1 %2548 }
 0x4af   :  { %v4487_v16 = vpop.permute.xlu1 %2538 }
 0x4b0   :  { %4966 = vst [vmem:[#allocation9_spill] sm:$0xff] %v4487_v16 }
 0x4b3   :  { %v762_v18 = vpop.permute.xlu1 %761 }
 0x52a   :  { %v811_v19 = vpop.f32.mrf.mxu0 }
 0x52b   :  { %v812_v22 = vadd.f32 %v811_v19, %v762_v18  ;;  %v3739_v18 = vld [vmem:[%s4953_s2 + $0x50] sm:$0xff]  }
 0x52c   :  { %v3479_v23 = vpop.f32.mrf.mxu0 }
 0x52d   :  { %v4490_v26 = vadd.f32 %v812_v22, %v417_v21  ;;  %v3740_v21 = vld [vmem:[%s4953_s2 + $0x58] sm:$0xff]  }
 0x52e   :  { %v814_v25 = vpop.f32.mrf.mxu0 }
 0x52f   :  { %v815_v28 = vadd.f32 %v814_v25, %v767_v31 }
 0x530   :  { %v3480_v29 = vpop.f32.mrf.mxu0 }
 0x531   :  { %v4493_v27 = vadd.f32 %v815_v28, %v4317_v60  ;;  %v3738_v60 = vld [vmem:[%s4953_s2 + $0x48] sm:$0xff]  }
 0x533   :  { %v820_v30 = vpack.c.bf16 %v4493_v27, %v4493_v27 }
 0x535   :  { %3498 = vmatmul.mubr.bf16.vlgmr.msra.gmra.mxu1 %v820_v30  ;;  %v928_v37 = vrot.slane %v820_v30, 4 }
 0x5f5   :  { %v920_v54 = vpop.f32.mrf.mxu1 }
 0x5f6   :  { %v926_v34 = vpack.c.bf16 %v920_v54, %v920_v54 }
 0x5f7   :  { %v3499_v38 = vpop.f32.mrf.mxu1 }
 0x5f8   :  { %v931_v31 = vsel %vm140_vm2, %v926_v34, %v928_v37 }
 0x5f9   :  { %v923_v17 = vpop.f32.mrf.mxu1  ;;  %3501 = vmatprep.subr.bf16.mxu0 %v931_v31 }
 0x5fa   :  { %3502 = vmatpush3.bf16.msra.mxu0 %v931_v31 }
 0x5fb   :  { %v3500_v19 = vpop.f32.mrf.mxu1  ;;  %3511 = vmatprep.subr.bf16.mxu0 %v4960_v1 }
 0x5fd   :  { %3504 = vmatmul.mubr.msk.bf16.vlgmr.msra.gmra.mxu0 %vm221_vm1, %v3738_v60 }
 0x5fe   :  { %3507 = vmatprep.mubr.msk.bf16.mxu0 %vm221_vm1, %v3739_v18 }
 0x605   :  { %3508 = vmatmul.mubr.msk.bf16.gmra.mxu0 %vm221_vm1, %v3740_v21 }
 0x606   :  { %3519 = vmatprep.mubr.msk.bf16.mxu0 %vm3929_vm0, %v4960_v1 }
 0x6bd   :  { %v3505_v22 = vpop.f32.mrf.mxu0 }
 0x6be   :  { %v4521_v30 = vadd.f32 %v3505_v22, %v4409_v39 }
 0x6bf   :  { %v1057_v23 = vpop.f32.mrf.mxu0 }
 0x6c0   :  { %v1100_v60 = vmul.f32 1.442695, %v4521_v30  ;;  %v4531_v18 = vadd.f32 %v1057_v23, %v4413_v41  ;;  %vm1090_vm13 = vcmp.gt.f32.partialorder %v4521_v30, 0.0 }
 0x6c1   :  { %v3506_v25 = vpop.f32.mrf.mxu0 }
 0x6c2   :  { %v4518_v28 = vadd.f32 %v3506_v25, %v4411_v40  ;;  %vm1088_vm15 = vcmp.gt.f32.partialorder %v4531_v18, 0.0 }
 0x6c3   :  { %v1060_v29 = vpop.f32.mrf.mxu0 }
 0x6c4   :  { %v1102_v34 = vmul.f32 1.442695, %v4518_v28  ;;  %v4526_v37 = vadd.f32 %v1060_v29, %v4415_v43  ;;  %vm1091_vm12 = vcmp.gt.f32.partialorder %v4518_v28, 0.0 }
 0x6c5   :  { %v3509_v24 = vpop.f32.mrf.mxu0 }
 0x6c6   :  { %v1082_v54 = vadd.f32 %v3509_v24, %v4390_v32  ;;  %v1098_v32 = vmul.f32 1.442695, %v4526_v37  ;;  %vm1089_vm14 = vcmp.gt.f32.partialorder %v4526_v37, 0.0 }
 0x6c7   :  { %v1073_v38 = vpop.f32.mrf.mxu0 }
 0x6c8   :  { %v1108_v31 = vmul.f32 1.442695, %v1082_v54  ;;  %v1074_v17 = vadd.f32 %v1073_v38, %v4397_v35  ;;  %v1096_v35 = vmul.f32 1.442695, %v4531_v18  ;;  %vm1094_vm7 = vcmp.gt.f32.partialorder %v1082_v54, 0.0 }
 0x6c9   :  { %v3510_v40 = vpop.f32.mrf.mxu0 }
 0x6ca   :  { %3826 = vpow2.f32 %v1108_v31  ;;  %v1104_v39 = vmul.f32 1.442695, %v1074_v17  ;;  %v1085_v19 = vadd.f32 %v3510_v40, %v4392_v33  ;;  %vm1092_vm9 = vcmp.gt.f32.partialorder %v1074_v17, 0.0 }
 0x6cb   :  { %3828 = vpow2.f32 %v1102_v34  ;;  %v1076_v21 = vpop.f32.mrf.mxu0 }
 0x6cc   :  { %3830 = vpow2.f32 %v1104_v39  ;;  %v1110_v43 = vmul.f32 1.442695, %v1085_v19  ;;  %v1077_v22 = vadd.f32 %v1076_v21, %v4400_v36  ;;  %vm1095_vm8 = vcmp.gt.f32.partialorder %v1085_v19, 0.0 }
 0x6cd   :  { %3832 = vpow2.f32 %v1100_v60 }
 0x6ce   :  { %3834 = vpow2.f32 %v1110_v43  ;;  %v1106_v25 = vmul.f32 1.442695, %v1077_v22  ;;  %vm1093_vm10 = vcmp.gt.f32.partialorder %v1077_v22, 0.0 }
 0x6cf   :  { %3836 = vpow2.f32 %v1098_v32 }
 0x6d0   :  { %3838 = vpow2.f32 %v1106_v25 }
 0x6d1   :  { %3840 = vpow2.f32 %v1096_v35 }
 0x6d7   :  { %v3827_v41 = vpop.eup %3826 }
 0x6d8   :  { %v3829_v23 = vpop.eup %3828  ;;  %v3005_v29 = vadd.f32 -1.0, %v3827_v41 }
 0x6d9   :  { %v3831_v33 = vpop.eup %3830  ;;  %v3002_v39 = vadd.f32 -1.0, %v3829_v23 }
 0x6da   :  { %v3833_v24 = vpop.eup %3832  ;;  %v1126_v34 = vmul.f32 1.6732632, %v3005_v29  ;;  %v3003_v38 = vadd.f32 -1.0, %v3831_v33 }
 0x6db   :  { %v3835_v31 = vpop.eup %3834  ;;  %v3001_v60 = vadd.f32 -1.0, %v3833_v24  ;;  %v1123_v35 = vmul.f32 1.6732632, %v3002_v39 }
 0x6dc   :  { %v3837_v40 = vpop.eup %3836  ;;  %v3006_v1 = vadd.f32 -1.0, %v3835_v31  ;;  %v1134_v21 = vsel %vm1094_vm7, %v1082_v54, %v1126_v34  ;;  %v1124_v43 = vmul.f32 1.6732632, %v3003_v38 }
 0x6dd   :  { %v3839_v36 = vpop.eup %3838  ;;  %v3000_v10 = vadd.f32 -1.0, %v3837_v40  ;;  %v1142_v11 = vmul.f32 1.050701, %v1134_v21  ;;  %v1122_v33 = vmul.f32 1.6732632, %v3001_v60  ;;  %v4967_v40 = vmov 0.0  }
 0x6de   :  { %v1127_v12 = vmul.f32 1.6732632, %v3006_v1  ;;  %v3004_v32 = vadd.f32 -1.0, %v3839_v36  ;;  %v3841_v25 = vpop.eup %3840  ;;  %v1132_v31 = vsel %vm1092_vm9, %v1074_v17, %v1124_v43  ;;  %v1131_v1 = vsel %vm1091_vm12, %v4518_v28, %v1123_v35  ;;  %v3741_v36 = vld [vmem:[%s4955_s4 + $0x10] sm:$0xff]   ;;  %v3744_v60 = vld [vmem:[%s4952_s1 + $0xe8] sm:$0xff]   ;;  %v3745_v21 = vld [vmem:[%s4952_s1 + $0xe0] sm:$0xff]  }
 0x6df   :  { %v2999_v23 = vadd.f32 -1.0, %v3841_v25  ;;  %v1121_v34 = vmul.f32 1.6732632, %v3000_v10  ;;  %v1140_v38 = vmul.f32 1.050701, %v1132_v31  ;;  %v3746_v43 = vld [vmem:[%s4952_s1 + $0xd8] sm:$0xff]  }
 0x6e0   :  { %v1135_v41 = vsel %vm1095_vm8, %v1085_v19, %v1127_v12  ;;  %v1125_v15 = vmul.f32 1.6732632, %v3004_v32  ;;  %v1130_v12 = vsel %vm1090_vm13, %v4521_v30, %v1122_v33  ;;  %v1139_v39 = vmul.f32 1.050701, %v1131_v1  ;;  %v3747_v32 = vld [vmem:[%s4952_s1 + $0xd0] sm:$0xff]   ;;  %v3748_v25 = vld [vmem:[%s4952_s1 + $0xc8] sm:$0xff]  }
 0x6e1   :  { %v1143_v29 = vmul.f32 1.050701, %v1135_v41  ;;  %v1120_v19 = vmul.f32 1.6732632, %v2999_v23  ;;  %v1129_v17 = vsel %vm1089_vm14, %v4526_v37, %v1121_v34  ;;  %v3742_v37 = vld [vmem:[%s4952_s1 + $0xf8] sm:$0xff]   ;;  %v3749_v35 = vld [vmem:[%s4952_s1 + $0xc0] sm:$0xff]   ;;  %v1157_v41 = vpop.permute.xlu0 %1156 }
 0x6e2   :  { %v1133_v16 = vsel %vm1093_vm10, %v1077_v22, %v1125_v15  ;;  %v1137_v28 = vmul.f32 1.050701, %v1129_v17 }
 0x6e3   :  { %v1150_v54 = vpack.c.bf16 %v1143_v29, %v1142_v11  ;;  %v1141_v24 = vmul.f32 1.050701, %v1133_v16  ;;  %v1138_v11 = vmul.f32 1.050701, %v1130_v12  ;;  %v1128_v10 = vsel %vm1088_vm15, %v4531_v18, %v1120_v19  ;;  %v3743_v18 = vld [vmem:[%s4952_s1 + $0xf0] sm:$0xff]   ;;  %v3750_v12 = vld [vmem:[%s4953_s2 + $0x60] sm:$0xff]  }
 0x6e4   :  { %v1136_v30 = vmul.f32 1.050701, %v1128_v10  ;;  %3545 = vmatprep.mubr.msk.bf16.mxu1 %vm221_vm1, %v3750_v12 }
 0x6e5   :  { %3512 = vmatpush3.bf16.msra.mxu0 %v1150_v54  ;;  %v1149_v15 = vpack.c.bf16 %v1141_v24, %v1140_v38  ;;  %v1148_v16 = vpack.c.bf16 %v1139_v39, %v1138_v11  ;;  %v3752_v11 = vld [vmem:[%s4953_s2 + $0x70] sm:$0xff]  }
 0x6e6   :  { %3513 = vmatprep.subr.bf16.mxu0 %v4967_v40  ;;  %v1147_v22 = vpack.c.bf16 %v1137_v28, %v1136_v30 }
 0x6e9   :  { %3514 = vmatpush3.bf16.msra.mxu0 %v1149_v15 }
 0x6ea   :  { %3515 = vmatprep.subr.bf16.mxu0 %v4967_v40 }
 0x6ed   :  { %3516 = vmatpush3.bf16.msra.mxu0 %v1148_v16  ;;  %v3753_v16 = vld [vmem:[%s4953_s2 + $0x78] sm:$0xff]  }
 0x6ee   :  { %3517 = vmatprep.subr.bf16.mxu0 %v4967_v40 }
 0x6f1   :  { %3518 = vmatpush3.bf16.msra.mxu0 %v1147_v22 }
 0x6f2   :  { %3523 = vmatprep.subr.bf16.mxu0 %v4967_v40 }
 0x6f4   :  { %3520 = vmatmul.mubr.msk.bf16.vlgmr.msra.gmra.mxu0 %vm378_vm11, %v3741_v36 }
 0x6f5   :  { %3524 = vmatpush3.bf16.msra.mxu0 %v3742_v37  ;;  %3539 = vmatprep.mubr.msk.bf16.mxu0 %vm3929_vm0, %v4967_v40 }
 0x6f6   :  { %3525 = vmatprep.subr.bf16.mxu0 %v4967_v40 }
 0x6f9   :  { %3526 = vmatpush3.bf16.msra.mxu0 %v3743_v18 }
 0x6fa   :  { %3527 = vmatprep.subr.bf16.mxu0 %v4967_v40 }
 0x6fd   :  { %3528 = vmatpush3.bf16.msra.mxu0 %v3744_v60 }
 0x6fe   :  { %3529 = vmatprep.subr.bf16.mxu0 %v4967_v40 }
 0x701   :  { %3530 = vmatpush3.bf16.msra.mxu0 %v3745_v21 }
 0x702   :  { %3531 = vmatprep.subr.bf16.mxu0 %v4967_v40 }
 0x705   :  { %3532 = vmatpush3.bf16.msra.mxu0 %v3746_v43 }
 0x706   :  { %3533 = vmatprep.subr.bf16.mxu0 %v4967_v40 }
 0x709   :  { %3534 = vmatpush3.bf16.msra.mxu0 %v3747_v32 }
 0x70a   :  { %3535 = vmatprep.subr.bf16.mxu0 %v4967_v40 }
 0x70d   :  { %3536 = vmatpush3.bf16.msra.mxu0 %v3748_v25 }
 0x70e   :  { %3537 = vmatprep.subr.bf16.mxu0 %v4967_v40 }
 0x711   :  { %3538 = vmatpush3.bf16.msra.mxu0 %v3749_v35 }
 0x7b4   :  { %v1206_v29 = vpop.f32.mrf.mxu0 }
 0x7b5   :  { %v1207_v33 = vadd.f32 %v1206_v29, %v1157_v41 }
 0x7b6   :  { %v3521_v23 = vpop.f32.mrf.mxu0 }
 0x7b7   :  { %v4587_v31 = vadd.f32 %v1207_v33, %v4490_v26 }
 0x7b8   :  { %v1209_v54 = vpop.f32.mrf.mxu0 }
 0x7b9   :  { %v1210_v24 = vadd.f32 %v1209_v54, %v4417_v42 }
 0x7ba   :  { %v3522_v1 = vpop.f32.mrf.mxu0 }
 0x7bb   :  { %v4591_v34 = vadd.f32 %v1210_v24, %v4493_v27  ;;  %v3751_v27 = vld [vmem:[%s4953_s2 + $0x68] sm:$0xff]  }
 0x7bd   :  { %v1215_v38 = vpack.c.bf16 %v4591_v34, %v4591_v34 }
 0x7bf   :  { %3540 = vmatmul.mubr.bf16.vlgmr.msra.gmra.mxu0 %v1215_v38  ;;  %v1323_v39 = vrot.slane %v1215_v38, 4 }
 0x87f   :  { %v1315_v19 = vpop.f32.mrf.mxu0 }
 0x880   :  { %v1321_v26 = vpack.c.bf16 %v1315_v19, %v1315_v19 }
 0x881   :  { %v3541_v15 = vpop.f32.mrf.mxu0 }
 0x882   :  { %v1326_v42 = vsel %vm140_vm2, %v1321_v26, %v1323_v39 }
 0x883   :  { %v1318_v17 = vpop.f32.mrf.mxu0  ;;  %3543 = vmatprep.subr.bf16.mxu1 %v1326_v42 }
 0x884   :  { %3544 = vmatpush3.bf16.msra.mxu1 %v1326_v42 }
 0x885   :  { %v3542_v10 = vpop.f32.mrf.mxu0  ;;  %3553 = vmatprep.subr.bf16.mxu1 %v4967_v40 }
 0x887   :  { %3546 = vmatmul.mubr.msk.bf16.vlgmr.msra.gmra.mxu1 %vm221_vm1, %v3751_v27 }
 0x888   :  { %3549 = vmatprep.mubr.msk.bf16.mxu1 %vm221_vm1, %v3752_v11 }
 0x88f   :  { %3550 = vmatmul.mubr.msk.bf16.gmra.mxu1 %vm221_vm1, %v3753_v16 }
 0x890   :  { %3561 = vmatprep.mubr.msk.bf16.mxu1 %vm3929_vm0, %v4967_v40 }
 0x947   :  { %v3547_v28 = vpop.f32.mrf.mxu1 }
 0x948   :  { %v4619_v18 = vadd.f32 %v3547_v28, %v4427_v48 }
 0x949   :  { %v1452_v30 = vpop.f32.mrf.mxu1 }
 0x94a   :  { %v1495_v29 = vmul.f32 1.442695, %v4619_v18  ;;  %v4629_v33 = vadd.f32 %v1452_v30, %v4431_v50  ;;  %vm1485_vm8 = vcmp.gt.f32.partialorder %v4619_v18, 0.0 }
 0x94b   :  { %v3548_v22 = vpop.f32.mrf.mxu1 }
 0x94c   :  { %v4616_v36 = vadd.f32 %v3548_v22, %v4429_v49  ;;  %vm1483_vm10 = vcmp.gt.f32.partialorder %v4629_v33, 0.0 }
 0x94d   :  { %v1455_v37 = vpop.f32.mrf.mxu1 }
 0x94e   :  { %v1497_v43 = vmul.f32 1.442695, %v4616_v36  ;;  %v4624_v32 = vadd.f32 %v1455_v37, %v4433_v51  ;;  %vm1486_vm7 = vcmp.gt.f32.partialorder %v4616_v36, 0.0 }
 0x94f   :  { %v3551_v60 = vpop.f32.mrf.mxu1 }
 0x950   :  { %v1477_v21 = vadd.f32 %v3551_v60, %v4419_v44  ;;  %v1493_v44 = vmul.f32 1.442695, %v4624_v32  ;;  %vm1484_vm9 = vcmp.gt.f32.partialorder %v4624_v32, 0.0 }
 0x951   :  { %v1468_v25 = vpop.f32.mrf.mxu1 }
 0x952   :  { %v1503_v35 = vmul.f32 1.442695, %v1477_v21  ;;  %v1469_v41 = vadd.f32 %v1468_v25, %v4423_v46  ;;  %v1491_v46 = vmul.f32 1.442695, %v4629_v33  ;;  %vm1489_vm3 = vcmp.gt.f32.partialorder %v1477_v21, 0.0 }
 0x953   :  { %v3552_v49 = vpop.f32.mrf.mxu1 }
 0x954   :  { %3842 = vpow2.f32 %v1503_v35  ;;  %v1499_v48 = vmul.f32 1.442695, %v1469_v41  ;;  %v1480_v23 = vadd.f32 %v3552_v49, %v4421_v45  ;;  %vm1487_vm5 = vcmp.gt.f32.partialorder %v1469_v41, 0.0 }
 0x955   :  { %3844 = vpow2.f32 %v1497_v43  ;;  %v1471_v54 = vpop.f32.mrf.mxu1 }
 0x956   :  { %3846 = vpow2.f32 %v1499_v48  ;;  %v1505_v51 = vmul.f32 1.442695, %v1480_v23  ;;  %v1472_v24 = vadd.f32 %v1471_v54, %v4425_v47  ;;  %vm1490_vm4 = vcmp.gt.f32.partialorder %v1480_v23, 0.0 }
 0x957   :  { %3848 = vpow2.f32 %v1495_v29 }
 0x958   :  { %3850 = vpow2.f32 %v1505_v51  ;;  %v1501_v1 = vmul.f32 1.442695, %v1472_v24  ;;  %vm1488_vm6 = vcmp.gt.f32.partialorder %v1472_v24, 0.0 }
 0x959   :  { %3852 = vpow2.f32 %v1493_v44 }
 0x95a   :  { %3854 = vpow2.f32 %v1501_v1 }
 0x95b   :  { %3856 = vpow2.f32 %v1491_v46 }
 0x961   :  { %v3843_v50 = vpop.eup %3842 }
 0x962   :  { %v3845_v38 = vpop.eup %3844  ;;  %v3067_v12 = vadd.f32 -1.0, %v3843_v50 }
 0x963   :  { %v3847_v45 = vpop.eup %3846  ;;  %v3064_v17 = vadd.f32 -1.0, %v3845_v38 }
 0x964   :  { %v3849_v19 = vpop.eup %3848  ;;  %v1521_v26 = vmul.f32 1.6732632, %v3067_v12  ;;  %v3065_v39 = vadd.f32 -1.0, %v3847_v45 }
 0x965   :  { %v3851_v15 = vpop.eup %3850  ;;  %v3063_v11 = vadd.f32 -1.0, %v3849_v19  ;;  %v1518_v37 = vmul.f32 1.6732632, %v3064_v17  ;;  %v3758_v17 = vld [vmem:[%s4952_s1 + $0x120] sm:$0xff]  }
 0x966   :  { %v3853_v42 = vpop.eup %3852  ;;  %v3068_v27 = vadd.f32 -1.0, %v3851_v15  ;;  %v1529_v10 = vsel %vm1489_vm3, %v1477_v21, %v1521_v26  ;;  %v1519_v16 = vmul.f32 1.6732632, %v3065_v39  ;;  %v3754_v15 = vld [vmem:[%s4955_s4 + $0x18] sm:$0xff]  }
 0x967   :  { %v3855_v47 = vpop.eup %3854  ;;  %v3062_v60 = vadd.f32 -1.0, %v3853_v42  ;;  %v1537_v35 = vmul.f32 1.050701, %v1529_v10  ;;  %v1517_v49 = vmul.f32 1.6732632, %v3063_v11  ;;  %v1526_v46 = vsel %vm1486_vm7, %v4616_v36, %v1518_v37  ;;  %v3757_v42 = vld [vmem:[%s4952_s1 + $0x128] sm:$0xff]  }
 0x968   :  { %v1522_v28 = vmul.f32 1.6732632, %v3068_v27  ;;  %v3066_v30 = vadd.f32 -1.0, %v3855_v47  ;;  %v3857_v22 = vpop.eup %3856  ;;  %v1527_v44 = vsel %vm1487_vm5, %v1469_v41, %v1519_v16  ;;  %v1534_v12 = vmul.f32 1.050701, %v1526_v46  ;;  %v3759_v27 = vld [vmem:[%s4952_s1 + $0x118] sm:$0xff]   ;;  %v1552_v16 = vpop.permute.xlu1 %1551 }
 0x969   :  { %v3061_v48 = vadd.f32 -1.0, %v3857_v22  ;;  %v1516_v1 = vmul.f32 1.6732632, %v3062_v60  ;;  %v1535_v50 = vmul.f32 1.050701, %v1527_v44  ;;  %v3760_v47 = vld [vmem:[%s4952_s1 + $0x110] sm:$0xff]  }
 0x96a   :  { %v1530_v43 = vsel %vm1490_vm4, %v1480_v23, %v1522_v28  ;;  %v1520_v25 = vmul.f32 1.6732632, %v3066_v30  ;;  %v1525_v23 = vsel %vm1485_vm8, %v4619_v18, %v1517_v49  ;;  %v3761_v11 = vld [vmem:[%s4952_s1 + $0x108] sm:$0xff]   ;;  %v3762_v10 = vld [vmem:[%s4952_s1 + $0x100] sm:$0xff]  }
 0x96b   :  { %v1538_v29 = vmul.f32 1.050701, %v1530_v43  ;;  %v1515_v38 = vmul.f32 1.6732632, %v3061_v48  ;;  %v1533_v45 = vmul.f32 1.050701, %v1525_v23 }
 0x96c   :  { %v1528_v54 = vsel %vm1488_vm6, %v1472_v24, %v1520_v25  ;;  %v1524_v24 = vsel %vm1484_vm9, %v4624_v32, %v1516_v1  ;;  %v3755_v32 = vld [vmem:[%s4952_s1 + $0x138] sm:$0xff]   ;;  %v3763_v49 = vld [vmem:[%s4953_s2 + $0x80] sm:$0xff]  }
 0x96d   :  { %v1545_v21 = vpack.c.bf16 %v1538_v29, %v1537_v35  ;;  %v1536_v51 = vmul.f32 1.050701, %v1528_v54  ;;  %v1523_v36 = vsel %vm1483_vm10, %v4629_v33, %v1515_v38  ;;  %v1543_v19 = vpack.c.bf16 %v1534_v12, %v1533_v45  ;;  %v3756_v33 = vld [vmem:[%s4952_s1 + $0x130] sm:$0xff]   ;;  %3587 = vmatprep.mubr.msk.bf16.mxu0 %vm221_vm1, %v3763_v49  ;;  %v3766_v1 = vld [vmem:[%s4953_s2 + $0x98] sm:$0xff]  }
 0x96e   :  { %v1532_v26 = vmul.f32 1.050701, %v1524_v24  ;;  %v1531_v18 = vmul.f32 1.050701, %v1523_v36 }
 0x96f   :  { %3554 = vmatpush3.bf16.msra.mxu1 %v1545_v21  ;;  %v1544_v41 = vpack.c.bf16 %v1536_v51, %v1535_v50  ;;  %v3765_v51 = vld [vmem:[%s4953_s2 + $0x90] sm:$0xff]  }
 0x970   :  { %3555 = vmatprep.subr.bf16.mxu1 %v4967_v40  ;;  %v1542_v39 = vpack.c.bf16 %v1532_v26, %v1531_v18 }
 0x973   :  { %3556 = vmatpush3.bf16.msra.mxu1 %v1544_v41 }
 0x974   :  { %3557 = vmatprep.subr.bf16.mxu1 %v4967_v40 }
 0x977   :  { %3558 = vmatpush3.bf16.msra.mxu1 %v1543_v19 }
 0x978   :  { %3559 = vmatprep.subr.bf16.mxu1 %v4967_v40 }
 0x97b   :  { %3560 = vmatpush3.bf16.msra.mxu1 %v1542_v39 }
 0x97c   :  { %3565 = vmatprep.subr.bf16.mxu1 %v4967_v40 }
 0x97e   :  { %3562 = vmatmul.mubr.msk.bf16.vlgmr.msra.gmra.mxu1 %vm378_vm11, %v3754_v15 }
 0x97f   :  { %3566 = vmatpush3.bf16.msra.mxu1 %v3755_v32  ;;  %3581 = vmatprep.mubr.msk.bf16.mxu1 %vm3929_vm0, %v4967_v40 }
 0x980   :  { %3567 = vmatprep.subr.bf16.mxu1 %v4967_v40 }
 0x983   :  { %3568 = vmatpush3.bf16.msra.mxu1 %v3756_v33 }
 0x984   :  { %3569 = vmatprep.subr.bf16.mxu1 %v4967_v40 }
 0x987   :  { %3570 = vmatpush3.bf16.msra.mxu1 %v3757_v42 }
 0x988   :  { %3571 = vmatprep.subr.bf16.mxu1 %v4967_v40 }
 0x98b   :  { %3572 = vmatpush3.bf16.msra.mxu1 %v3758_v17 }
 0x98c   :  { %3573 = vmatprep.subr.bf16.mxu1 %v4967_v40 }
 0x98f   :  { %3574 = vmatpush3.bf16.msra.mxu1 %v3759_v27 }
 0x990   :  { %3575 = vmatprep.subr.bf16.mxu1 %v4967_v40 }
 0x993   :  { %3576 = vmatpush3.bf16.msra.mxu1 %v3760_v47 }
 0x994   :  { %3577 = vmatprep.subr.bf16.mxu1 %v4967_v40 }
 0x997   :  { %3578 = vmatpush3.bf16.msra.mxu1 %v3761_v11 }
 0x998   :  { %3579 = vmatprep.subr.bf16.mxu1 %v4967_v40 }
 0x99b   :  { %3580 = vmatpush3.bf16.msra.mxu1 %v3762_v10 }
 0xa3e   :  { %v1601_v28 = vpop.f32.mrf.mxu1 }
 0xa3f   :  { %v1602_v30 = vadd.f32 %v1601_v28, %v1552_v16 }
 0xa40   :  { %v3563_v22 = vpop.f32.mrf.mxu1 }
 0xa41   :  { %v4685_v37 = vadd.f32 %v1602_v30, %v4587_v31 }
 0xa42   :  { %v1604_v60 = vpop.f32.mrf.mxu1 }
 0xa43   :  { %v1605_v43 = vadd.f32 %v1604_v60, %v4435_v52 }
 0xa44   :  { %v3564_v25 = vpop.f32.mrf.mxu1 }
 0xa45   :  { %v4689_v35 = vadd.f32 %v1605_v43, %v4591_v34  ;;  %v3764_v34 = vld [vmem:[%s4953_s2 + $0x88] sm:$0xff]  }
 0xa47   :  { %v1610_v29 = vpack.c.bf16 %v4689_v35, %v4689_v35 }
 0xa49   :  { %3582 = vmatmul.mubr.bf16.vlgmr.msra.gmra.mxu1 %v1610_v29  ;;  %v1718_v44 = vrot.slane %v1610_v29, 4 }
 0xb09   :  { %v1710_v48 = vpop.f32.mrf.mxu1 }
 0xb0a   :  { %v1716_v31 = vpack.c.bf16 %v1710_v48, %v1710_v48 }
 0xb0b   :  { %v3583_v54 = vpop.f32.mrf.mxu1 }
 0xb0c   :  { %v1721_v52 = vsel %vm140_vm2, %v1716_v31, %v1718_v44 }
 0xb0d   :  { %v1713_v21 = vpop.f32.mrf.mxu1  ;;  %3585 = vmatprep.subr.bf16.mxu0 %v1721_v52 }
 0xb0e   :  { %3586 = vmatpush3.bf16.msra.mxu0 %v1721_v52 }
 0xb0f   :  { %v3584_v46 = vpop.f32.mrf.mxu1  ;;  %3595 = vmatprep.subr.bf16.mxu0 %v4967_v40 }
 0xb11   :  { %3588 = vmatmul.mubr.msk.bf16.vlgmr.msra.gmra.mxu0 %vm221_vm1, %v3764_v34 }
 0xb12   :  { %3591 = vmatprep.mubr.msk.bf16.mxu0 %vm221_vm1, %v3765_v51 }
 0xb19   :  { %3592 = vmatmul.mubr.msk.bf16.gmra.mxu0 %vm221_vm1, %v3766_v1 }
 0xb1a   :  { %3603 = vmatprep.mubr.msk.bf16.mxu0 %vm3929_vm0, %v4967_v40 }
 0xbd1   :  { %v3589_v50 = vpop.f32.mrf.mxu0 }
 0xbd2   :  { %v4717_v24 = vadd.f32 %v3589_v50, %v4445_v58 }
 0xbd3   :  { %v1847_v23 = vpop.f32.mrf.mxu0 }
 0xbd4   :  { %v1890_v32 = vmul.f32 1.442695, %v4717_v24  ;;  %v4727_v33 = vadd.f32 %v1847_v23, %v4449_v61  ;;  %vm1880_vm4 = vcmp.gt.f32.partialorder %v4717_v24, 0.0 }
 0xbd5   :  { %v3590_v38 = vpop.f32.mrf.mxu0 }
 0xbd6   :  { %v4714_v12 = vadd.f32 %v3590_v38, %v4447_v59  ;;  %vm1878_vm6 = vcmp.gt.f32.partialorder %v4727_v33, 0.0 }
 0xbd7   :  { %v1850_v41 = vpop.f32.mrf.mxu0 }
 0xbd8   :  { %v1892_v19 = vmul.f32 1.442695, %v4714_v12  ;;  %v4722_v26 = vadd.f32 %v1850_v41, %v4451_v62  ;;  %vm1881_vm3 = vcmp.gt.f32.partialorder %v4714_v12, 0.0 }
 0xbd9   :  { %v3593_v45 = vpop.f32.mrf.mxu0 }
 0xbda   :  { %v1872_v36 = vadd.f32 %v3593_v45, %v4437_v53  ;;  %v1888_v53 = vmul.f32 1.442695, %v4722_v26  ;;  %vm1879_vm5 = vcmp.gt.f32.partialorder %v4722_v26, 0.0 }
 0xbdb   :  { %v1863_v18 = vpop.f32.mrf.mxu0 }
 0xbdc   :  { %v1898_v39 = vmul.f32 1.442695, %v1872_v36  ;;  %v1864_v15 = vadd.f32 %v1863_v18, %v4441_v56  ;;  %v1886_v56 = vmul.f32 1.442695, %v4727_v33  ;;  %vm1884_vm12 = vcmp.gt.f32.partialorder %v1872_v36, 0.0 }
 0xbdd   :  { %v3594_v59 = vpop.f32.mrf.mxu0 }
 0xbde   :  { %3858 = vpow2.f32 %v1898_v39  ;;  %v1894_v58 = vmul.f32 1.442695, %v1864_v15  ;;  %v1875_v42 = vadd.f32 %v3594_v59, %v4439_v55  ;;  %vm1882_vm14 = vcmp.gt.f32.partialorder %v1864_v15, 0.0 }
 0xbdf   :  { %3860 = vpow2.f32 %v1892_v19  ;;  %v1866_v17 = vpop.f32.mrf.mxu0 }
 0xbe0   :  { %3862 = vpow2.f32 %v1894_v58  ;;  %v1900_v62 = vmul.f32 1.442695, %v1875_v42  ;;  %v1867_v27 = vadd.f32 %v1866_v17, %v4443_v57  ;;  %vm1885_vm13 = vcmp.gt.f32.partialorder %v1875_v42, 0.0 }
 0xbe1   :  { %3864 = vpow2.f32 %v1890_v32 }
 0xbe2   :  { %3866 = vpow2.f32 %v1900_v62  ;;  %v1896_v47 = vmul.f32 1.442695, %v1867_v27  ;;  %vm1883_vm15 = vcmp.gt.f32.partialorder %v1867_v27, 0.0 }
 0xbe3   :  { %3868 = vpow2.f32 %v1888_v53 }
 0xbe4   :  { %3870 = vpow2.f32 %v1896_v47  ;;  %v3770_v47 = vld [vmem:[%s4952_s1 + $0x168] sm:$0xff]  }
 0xbe5   :  { %3872 = vpow2.f32 %v1886_v56  ;;  %v3767_v56 = vld [vmem:[%s4955_s4 + $0x20] sm:$0xff]  }
 0xbeb   :  { %v3859_v61 = vpop.eup %3858 }
 0xbec   :  { %v3861_v11 = vpop.eup %3860  ;;  %v3129_v10 = vadd.f32 -1.0, %v3859_v61  ;;  %v3771_v61 = vld [vmem:[%s4952_s1 + $0x160] sm:$0xff]  }
 0xbed   :  { %v3863_v55 = vpop.eup %3862  ;;  %v3126_v43 = vadd.f32 -1.0, %v3861_v11  ;;  %v3772_v11 = vld [vmem:[%s4952_s1 + $0x158] sm:$0xff]  }
 0xbee   :  { %v3865_v16 = vpop.eup %3864  ;;  %v1916_v28 = vmul.f32 1.6732632, %v3129_v10  ;;  %v3127_v30 = vadd.f32 -1.0, %v3863_v55  ;;  %v3773_v10 = vld [vmem:[%s4952_s1 + $0x150] sm:$0xff]   ;;  %v3774_v55 = vld [vmem:[%s4952_s1 + $0x148] sm:$0xff]  }
 0xbef   :  { %v3867_v22 = vpop.eup %3866  ;;  %v3125_v29 = vadd.f32 -1.0, %v3865_v16  ;;  %v1913_v52 = vmul.f32 1.6732632, %v3126_v43  ;;  %v3775_v16 = vld [vmem:[%s4952_s1 + $0x140] sm:$0xff]  }
 0xbf0   :  { %v3869_v60 = vpop.eup %3868  ;;  %v3130_v25 = vadd.f32 -1.0, %v3867_v22  ;;  %v1924_v49 = vsel %vm1884_vm12, %v1872_v36, %v1916_v28  ;;  %v1914_v48 = vmul.f32 1.6732632, %v3127_v30  ;;  %v1947_v28 = vpop.permute.xlu0 %1946 }
 0xbf1   :  { %v3871_v57 = vpop.eup %3870  ;;  %v3124_v21 = vadd.f32 -1.0, %v3869_v60  ;;  %v1932_v46 = vmul.f32 1.050701, %v1924_v49  ;;  %v1912_v50 = vmul.f32 1.6732632, %v3125_v29  ;;  %v1921_v19 = vsel %vm1881_vm3, %v4714_v12, %v1913_v52 }
 0xbf2   :  { %v1917_v31 = vmul.f32 1.6732632, %v3130_v25  ;;  %v3128_v44 = vadd.f32 -1.0, %v3871_v57  ;;  %v3873_v54 = vpop.eup %3872  ;;  %v1922_v38 = vsel %vm1882_vm14, %v1864_v15, %v1914_v48  ;;  %v1929_v58 = vmul.f32 1.050701, %v1921_v19 }
 0xbf3   :  { %v3123_v23 = vadd.f32 -1.0, %v3873_v54  ;;  %v1911_v18 = vmul.f32 1.6732632, %v3124_v21  ;;  %v1930_v39 = vmul.f32 1.050701, %v1922_v38  ;;  %v1920_v32 = vsel %vm1880_vm4, %v4717_v24, %v1912_v50 }
 0xbf4   :  { %v1925_v34 = vsel %vm1885_vm13, %v1875_v42, %v1917_v31  ;;  %v1915_v51 = vmul.f32 1.6732632, %v3128_v44  ;;  %v1928_v53 = vmul.f32 1.050701, %v1920_v32  ;;  %v3776_v31 = vld [vmem:[%s4953_s2 + $0xa0] sm:$0xff]  }
 0xbf5   :  { %v1933_v1 = vmul.f32 1.050701, %v1925_v34  ;;  %v1910_v59 = vmul.f32 1.6732632, %v3123_v23  ;;  %v1919_v42 = vsel %vm1879_vm5, %v4722_v26, %v1911_v18  ;;  %v3768_v26 = vld [vmem:[%s4952_s1 + $0x178] sm:$0xff]   ;;  %3629 = vmatprep.mubr.msk.bf16.mxu1 %vm221_vm1, %v3776_v31  ;;  %v3778_v34 = vld [vmem:[%s4953_s2 + $0xb0] sm:$0xff]  }
 0xbf6   :  { %v1923_v41 = vsel %vm1883_vm15, %v1867_v27, %v1915_v51  ;;  %v1938_v17 = vpack.c.bf16 %v1929_v58, %v1928_v53  ;;  %v1927_v62 = vmul.f32 1.050701, %v1919_v42 }
 0xbf7   :  { %v1940_v45 = vpack.c.bf16 %v1933_v1, %v1932_v46  ;;  %v1931_v36 = vmul.f32 1.050701, %v1923_v41  ;;  %v1918_v12 = vsel %vm1878_vm6, %v4727_v33, %v1910_v59  ;;  %v3769_v33 = vld [vmem:[%s4952_s1 + $0x170] sm:$0xff]   ;;  %v3779_v46 = vld [vmem:[%s4953_s2 + $0xb8] sm:$0xff]  }
 0xbf8   :  { %v1926_v24 = vmul.f32 1.050701, %v1918_v12 }
 0xbf9   :  { %3596 = vmatpush3.bf16.msra.mxu0 %v1940_v45  ;;  %v1939_v15 = vpack.c.bf16 %v1931_v36, %v1930_v39 }
 0xbfa   :  { %3597 = vmatprep.subr.bf16.mxu0 %v4967_v40  ;;  %v1937_v27 = vpack.c.bf16 %v1927_v62, %v1926_v24 }
 0xbfd   :  { %3598 = vmatpush3.bf16.msra.mxu0 %v1939_v15 }
 0xbfe   :  { %3599 = vmatprep.subr.bf16.mxu0 %v4967_v40 }
 0xc01   :  { %3600 = vmatpush3.bf16.msra.mxu0 %v1938_v17 }
 0xc02   :  { %3601 = vmatprep.subr.bf16.mxu0 %v4967_v40 }
 0xc05   :  { %3602 = vmatpush3.bf16.msra.mxu0 %v1937_v27 }
 0xc06   :  { %3607 = vmatprep.subr.bf16.mxu0 %v4967_v40 }
 0xc08   :  { %3604 = vmatmul.mubr.msk.bf16.vlgmr.msra.gmra.mxu0 %vm378_vm11, %v3767_v56 }
 0xc09   :  { %3608 = vmatpush3.bf16.msra.mxu0 %v3768_v26  ;;  %3623 = vmatprep.mubr.msk.bf16.mxu0 %vm3929_vm0, %v4967_v40 }
 0xc0a   :  { %3609 = vmatprep.subr.bf16.mxu0 %v4967_v40 }
 0xc0d   :  { %3610 = vmatpush3.bf16.msra.mxu0 %v3769_v33 }
 0xc0e   :  { %3611 = vmatprep.subr.bf16.mxu0 %v4967_v40 }
 0xc11   :  { %3612 = vmatpush3.bf16.msra.mxu0 %v3770_v47 }
 0xc12   :  { %3613 = vmatprep.subr.bf16.mxu0 %v4967_v40 }
 0xc15   :  { %3614 = vmatpush3.bf16.msra.mxu0 %v3771_v61 }
 0xc16   :  { %3615 = vmatprep.subr.bf16.mxu0 %v4967_v40 }
 0xc19   :  { %3616 = vmatpush3.bf16.msra.mxu0 %v3772_v11 }
 0xc1a   :  { %3617 = vmatprep.subr.bf16.mxu0 %v4967_v40 }
 0xc1d   :  { %3618 = vmatpush3.bf16.msra.mxu0 %v3773_v10 }
 0xc1e   :  { %3619 = vmatprep.subr.bf16.mxu0 %v4967_v40 }
 0xc21   :  { %3620 = vmatpush3.bf16.msra.mxu0 %v3774_v55 }
 0xc22   :  { %3621 = vmatprep.subr.bf16.mxu0 %v4967_v40 }
 0xc25   :  { %3622 = vmatpush3.bf16.msra.mxu0 %v3775_v16 }
 0xcc8   :  { %v1996_v30 = vpop.f32.mrf.mxu0 }
 0xcc9   :  { %v1997_v22 = vadd.f32 %v1996_v30, %v1947_v28 }
 0xcca   :  { %v3605_v60 = vpop.f32.mrf.mxu0 }
 0xccb   :  { %v4783_v43 = vadd.f32 %v1997_v22, %v4685_v37 }
 0xccc   :  { %v1999_v25 = vpop.f32.mrf.mxu0 }
 0xccd   :  { %v2000_v57 = vadd.f32 %v1999_v25, %v4453_v63 }
 0xcce   :  { %v3606_v29 = vpop.f32.mrf.mxu0 }
 0xccf   :  { %v4787_v49 = vadd.f32 %v2000_v57, %v4689_v35  ;;  %v3777_v35 = vld [vmem:[%s4953_s2 + $0xa8] sm:$0xff]  }
 0xcd1   :  { %v2005_v48 = vpack.c.bf16 %v4787_v49, %v4787_v49 }
 0xcd3   :  { %3624 = vmatmul.mubr.bf16.vlgmr.msra.gmra.mxu0 %v2005_v48  ;;  %v2113_v54 = vrot.slane %v2005_v48, 4 }
 0xd93   :  { %v2105_v44 = vpop.f32.mrf.mxu0 }
 0xd94   :  { %v2111_v37 = vpack.c.bf16 %v2105_v44, %v2105_v44 }
 0xd95   :  { %v3625_v52 = vpop.f32.mrf.mxu0 }
 0xd96   :  { %v2116_v63 = vsel %vm140_vm2, %v2111_v37, %v2113_v54 }
 0xd97   :  { %v2108_v21 = vpop.f32.mrf.mxu0  ;;  %3627 = vmatprep.subr.bf16.mxu1 %v2116_v63 }
 0xd98   :  { %3628 = vmatpush3.bf16.msra.mxu1 %v2116_v63 }
 0xd99   :  { %v3626_v51 = vpop.f32.mrf.mxu0  ;;  %3637 = vmatprep.subr.bf16.mxu1 %v4967_v40 }
 0xd9b   :  { %3630 = vmatmul.mubr.msk.bf16.vlgmr.msra.gmra.mxu1 %vm221_vm1, %v3777_v35 }
 0xd9c   :  { %3633 = vmatprep.mubr.msk.bf16.mxu1 %vm221_vm1, %v3778_v34 }
 0xda3   :  { %3634 = vmatmul.mubr.msk.bf16.gmra.mxu1 %vm221_vm1, %v3779_v46 }
 0xda4   :  { %3645 = vmatprep.mubr.msk.bf16.mxu1 %vm3929_vm0, %v4967_v40 }
 0xe5b   :  { %v3631_v1 = vpop.f32.mrf.mxu1 }
 0xe5c   :  { %v4815_v45 = vadd.f32 %v3631_v1, %v4463_v4 }
 0xe5d   :  { %v2242_v50 = vpop.f32.mrf.mxu1 }
 0xe5e   :  { %v2285_v15 = vmul.f32 1.442695, %v4815_v45  ;;  %v4825_v42 = vadd.f32 %v2242_v50, %v4467_v6  ;;  %vm2275_vm13 = vcmp.gt.f32.partialorder %v4815_v45, 0.0 }
 0xe5f   :  { %v3632_v23 = vpop.f32.mrf.mxu1 }
 0xe60   :  { %v4812_v38 = vadd.f32 %v3632_v23, %v4465_v5  ;;  %vm2273_vm15 = vcmp.gt.f32.partialorder %v4825_v42, 0.0 }
 0xe61   :  { %v2245_v41 = vpop.f32.mrf.mxu1 }
 0xe62   :  { %v2287_v18 = vmul.f32 1.442695, %v4812_v38  ;;  %v4820_v39 = vadd.f32 %v2245_v41, %v4469_v7  ;;  %vm2276_vm12 = vcmp.gt.f32.partialorder %v4812_v38, 0.0 }
 0xe63   :  { %v3635_v36 = vpop.f32.mrf.mxu1 }
 0xe64   :  { %v2267_v19 = vadd.f32 %v3635_v36, %v4455_v0  ;;  %v2283_v0 = vmul.f32 1.442695, %v4820_v39  ;;  %vm2274_vm14 = vcmp.gt.f32.partialorder %v4820_v39, 0.0 }
 0xe65   :  { %v2258_v32 = vpop.f32.mrf.mxu1 }
 0xe66   :  { %v2293_v59 = vmul.f32 1.442695, %v2267_v19  ;;  %v2259_v58 = vadd.f32 %v2258_v32, %v4459_v3  ;;  %v2281_v3 = vmul.f32 1.442695, %v4825_v42  ;;  %vm2279_vm7 = vcmp.gt.f32.partialorder %v2267_v19, 0.0 }
 0xe67   :  { %v3636_v5 = vpop.f32.mrf.mxu1 }
 0xe68   :  { %3874 = vpow2.f32 %v2293_v59  ;;  %v2289_v4 = vmul.f32 1.442695, %v2259_v58  ;;  %v2270_v53 = vadd.f32 %v3636_v5, %v4457_v2  ;;  %vm2277_vm9 = vcmp.gt.f32.partialorder %v2259_v58, 0.0  ;;  %v3783_v5 = vld [vmem:[%s4952_s1 + $0x1a8] sm:$0xff]  }
 0xe69   :  { %3876 = vpow2.f32 %v2287_v18  ;;  %v2261_v12 = vpop.f32.mrf.mxu1 }
 0xe6a   :  { %3878 = vpow2.f32 %v2289_v4  ;;  %v2295_v7 = vmul.f32 1.442695, %v2270_v53  ;;  %v2262_v17 = vadd.f32 %v2261_v12, %v4461_v20  ;;  %vm2280_vm8 = vcmp.gt.f32.partialorder %v2270_v53, 0.0  ;;  %v3785_v4 = vld [vmem:[%s4952_s1 + $0x198] sm:$0xff]   ;;  %v3788_v12 = vld [vmem:[%s4952_s1 + $0x180] sm:$0xff]  }
 0xe6b   :  { %3880 = vpow2.f32 %v2285_v15  ;;  %v3782_v15 = vld [vmem:[%s4952_s1 + $0x1b0] sm:$0xff]  }
 0xe6c   :  { %3882 = vpow2.f32 %v2295_v7  ;;  %v2291_v62 = vmul.f32 1.442695, %v2262_v17  ;;  %vm2278_vm10 = vcmp.gt.f32.partialorder %v2262_v17, 0.0  ;;  %v2342_v7 = vpop.permute.xlu1 %2341 }
 0xe6d   :  { %3884 = vpow2.f32 %v2283_v0  ;;  %v3787_v0 = vld [vmem:[%s4952_s1 + $0x188] sm:$0xff]  }
 0xe6e   :  { %3886 = vpow2.f32 %v2291_v62 }
 0xe6f   :  { %3888 = vpow2.f32 %v2281_v3 }
 0xe75   :  { %v3875_v6 = vpop.eup %3874 }
 0xe76   :  { %v3877_v24 = vpop.eup %3876  ;;  %v3191_v27 = vadd.f32 -1.0, %v3875_v6 }
 0xe77   :  { %v3879_v2 = vpop.eup %3878  ;;  %v3188_v11 = vadd.f32 -1.0, %v3877_v24 }
 0xe78   :  { %v3881_v56 = vpop.eup %3880  ;;  %v2311_v26 = vmul.f32 1.6732632, %v3191_v27  ;;  %v3189_v33 = vadd.f32 -1.0, %v3879_v2 }
 0xe79   :  { %v3883_v47 = vpop.eup %3882  ;;  %v3187_v55 = vadd.f32 -1.0, %v3881_v56  ;;  %v2308_v25 = vmul.f32 1.6732632, %v3188_v11 }
 0xe7a   :  { %v3885_v61 = vpop.eup %3884  ;;  %v3192_v10 = vadd.f32 -1.0, %v3883_v47  ;;  %v2319_v16 = vsel %vm2279_vm7, %v2267_v19, %v2311_v26  ;;  %v2309_v28 = vmul.f32 1.6732632, %v3189_v33  ;;  %v3789_v33 = vld [vmem:[%s4953_s2 + $0xc0] sm:$0xff]  }
 0xe7b   :  { %v3887_v20 = vpop.eup %3886  ;;  %v3186_v57 = vadd.f32 -1.0, %v3885_v61  ;;  %v2327_v31 = vmul.f32 1.050701, %v2319_v16  ;;  %v2307_v37 = vmul.f32 1.6732632, %v3187_v55  ;;  %v2316_v34 = vsel %vm2276_vm12, %v4812_v38, %v2308_v25  ;;  %3671 = vmatprep.mubr.msk.bf16.mxu0 %vm221_vm1, %v3789_v33  ;;  %v3792_v16 = vld [vmem:[%s4953_s2 + $0xd8] sm:$0xff]  }
 0xe7c   :  { %v2312_v30 = vmul.f32 1.6732632, %v3192_v10  ;;  %v3190_v22 = vadd.f32 -1.0, %v3887_v20  ;;  %v3889_v60 = vpop.eup %3888  ;;  %v2317_v52 = vsel %vm2277_vm9, %v2259_v58, %v2309_v28  ;;  %v2324_v23 = vmul.f32 1.050701, %v2316_v34  ;;  %v3780_v58 = vld [vmem:[%s4955_s4 + $0x28] sm:$0xff]  }
 0xe7d   :  { %v3185_v54 = vadd.f32 -1.0, %v3889_v60  ;;  %v2306_v51 = vmul.f32 1.6732632, %v3186_v57  ;;  %v2325_v46 = vmul.f32 1.050701, %v2317_v52  ;;  %v2315_v1 = vsel %vm2275_vm13, %v4815_v45, %v2307_v37  ;;  %v4970_v34 = vld [vmem:[#allocation8_spill] sm:$0xff] }
 0xe7e   :  { %v2320_v29 = vsel %vm2280_vm8, %v2270_v53, %v2312_v30  ;;  %v2310_v48 = vmul.f32 1.6732632, %v3190_v22  ;;  %v2323_v19 = vmul.f32 1.050701, %v2315_v1  ;;  %v3786_v53 = vld [vmem:[%s4952_s1 + $0x190] sm:$0xff]  }
 0xe7f   :  { %v2328_v44 = vmul.f32 1.050701, %v2320_v29  ;;  %v2305_v50 = vmul.f32 1.6732632, %v3185_v54  ;;  %v2314_v36 = vsel %vm2274_vm14, %v4820_v39, %v2306_v51  ;;  %v3781_v39 = vld [vmem:[%s4952_s1 + $0x1b8] sm:$0xff]  }
 0xe80   :  { %v2318_v63 = vsel %vm2278_vm10, %v2262_v17, %v2310_v48  ;;  %v2333_v18 = vpack.c.bf16 %v2324_v23, %v2323_v19  ;;  %v2322_v32 = vmul.f32 1.050701, %v2314_v36 }
 0xe81   :  { %v2335_v21 = vpack.c.bf16 %v2328_v44, %v2327_v31  ;;  %v2326_v35 = vmul.f32 1.050701, %v2318_v63  ;;  %v2313_v38 = vsel %vm2273_vm15, %v4825_v42, %v2305_v50  ;;  %v3784_v42 = vld [vmem:[%s4952_s1 + $0x1a0] sm:$0xff]   ;;  %v4968_v44 = vld [vmem:[#allocation9_spill] sm:$0xff]  ;;  %v4969_v63 = vld [vmem:[#allocation6_spill] sm:$0xff] }
 0xe82   :  { %v2321_v45 = vmul.f32 1.050701, %v2313_v38 }
 0xe83   :  { %3638 = vmatpush3.bf16.msra.mxu1 %v2335_v21  ;;  %v2334_v41 = vpack.c.bf16 %v2326_v35, %v2325_v46  ;;  %v4971_v46 = vld [vmem:[#allocation5_spill] sm:$0xff] }
 0xe84   :  { %3639 = vmatprep.subr.bf16.mxu1 %v4967_v40  ;;  %v2332_v59 = vpack.c.bf16 %v2322_v32, %v2321_v45 }
 0xe87   :  { %3640 = vmatpush3.bf16.msra.mxu1 %v2334_v41  ;;  %v4972_v41 = vld [vmem:[#allocation7_spill] sm:$0xff] }
 0xe88   :  { %3641 = vmatprep.subr.bf16.mxu1 %v4967_v40 }
 0xe8b   :  { %3642 = vmatpush3.bf16.msra.mxu1 %v2333_v18 }
 0xe8c   :  { %3643 = vmatprep.subr.bf16.mxu1 %v4967_v40 }
 0xe8f   :  { %3644 = vmatpush3.bf16.msra.mxu1 %v2332_v59 }
 0xe90   :  { %3649 = vmatprep.subr.bf16.mxu1 %v4967_v40 }
 0xe92   :  { %3646 = vmatmul.mubr.msk.bf16.vlgmr.msra.gmra.mxu1 %vm378_vm11, %v3780_v58 }
 0xe93   :  { %3650 = vmatpush3.bf16.msra.mxu1 %v3781_v39  ;;  %3665 = vmatprep.mubr.msk.bf16.mxu1 %vm3929_vm0, %v4967_v40 }
 0xe94   :  { %3651 = vmatprep.subr.bf16.mxu1 %v4967_v40 }
 0xe97   :  { %3652 = vmatpush3.bf16.msra.mxu1 %v3782_v15 }
 0xe98   :  { %3653 = vmatprep.subr.bf16.mxu1 %v4967_v40 }
 0xe9b   :  { %3654 = vmatpush3.bf16.msra.mxu1 %v3783_v5 }
 0xe9c   :  { %3655 = vmatprep.subr.bf16.mxu1 %v4967_v40 }
 0xe9f   :  { %3656 = vmatpush3.bf16.msra.mxu1 %v3784_v42 }
 0xea0   :  { %3657 = vmatprep.subr.bf16.mxu1 %v4967_v40 }
 0xea3   :  { %3658 = vmatpush3.bf16.msra.mxu1 %v3785_v4 }
 0xea4   :  { %3659 = vmatprep.subr.bf16.mxu1 %v4967_v40 }
 0xea7   :  { %3660 = vmatpush3.bf16.msra.mxu1 %v3786_v53 }
 0xea8   :  { %3661 = vmatprep.subr.bf16.mxu1 %v4967_v40 }
 0xeab   :  { %3662 = vmatpush3.bf16.msra.mxu1 %v3787_v0 }
 0xeac   :  { %3663 = vmatprep.subr.bf16.mxu1 %v4967_v40 }
 0xeaf   :  { %3664 = vmatpush3.bf16.msra.mxu1 %v3788_v12 }
 0xf52   :  { %v2391_v17 = vpop.f32.mrf.mxu1 }
 0xf53   :  { %v2392_v3 = vadd.f32 %v2391_v17, %v2342_v7 }
 0xf54   :  { %v3647_v62 = vpop.f32.mrf.mxu1 }
 0xf55   :  { %v4881_v6 = vadd.f32 %v2392_v3, %v4783_v43 }
 0xf56   :  { %v2394_v24 = vpop.f32.mrf.mxu1 }
 0xf57   :  { %v2395_v27 = vadd.f32 %v2394_v24, %v4471_v8  ;;  %v3790_v8 = vld [vmem:[%s4953_s2 + $0xc8] sm:$0xff]  }
 0xf58   :  { %v3648_v2 = vpop.f32.mrf.mxu1 }
 0xf59   :  { %v2399_v56 = vadd.f32 %v2395_v27, %v4787_v49  ;;  %v3791_v49 = vld [vmem:[%s4953_s2 + $0xd0] sm:$0xff]  }
 0xf5b   :  { %v2400_v26 = vpack.c.bf16 %v2399_v56, %v2399_v56 }
 0xf5d   :  { %3666 = vmatmul.mubr.bf16.vlgmr.msra.gmra.mxu1 %v2400_v26  ;;  %v2508_v61 = vrot.slane %v2400_v26, 4 }
0x101d   :  { %v2500_v47 = vpop.f32.mrf.mxu1 }
0x101e   :  { %v2506_v11 = vpack.c.bf16 %v2500_v47, %v2500_v47 }
0x101f   :  { %v3667_v10 = vpop.f32.mrf.mxu1 }
0x1020   :  { %v2511_v43 = vsel %vm140_vm2, %v2506_v11, %v2508_v61 }
0x1021   :  { %v2503_v20 = vpop.f32.mrf.mxu1  ;;  %3669 = vmatprep.subr.bf16.mxu0 %v2511_v43 }
0x1022   :  { %3670 = vmatpush3.bf16.msra.mxu0 %v2511_v43 }
0x1023   :  { %v3668_v55 = vpop.f32.mrf.mxu1  ;;  %3679 = vmatprep.subr.bf16.mxu0 %v4967_v40 }
0x1025   :  { %3672 = vmatmul.mubr.msk.bf16.vlgmr.msra.gmra.mxu0 %vm221_vm1, %v3790_v8 }
0x1026   :  { %3675 = vmatprep.mubr.msk.bf16.mxu0 %vm221_vm1, %v3791_v49 }
0x102d   :  { %3676 = vmatmul.mubr.msk.bf16.gmra.mxu0 %vm221_vm1, %v3792_v16 }
0x102e   :  { %3687 = vmatprep.mubr.msk.bf16.mxu0 %vm3929_vm0, %v4967_v40 }
0x10e5   :  { %v3673_v28 = vpop.f32.mrf.mxu0 }
0x10e6   :  { %v4909_v57 = vadd.f32 %v3673_v28, %v4481_v13 }
0x10e7   :  { %v2637_v30 = vpop.f32.mrf.mxu0 }
0x10e8   :  { %v2680_v35 = vmul.f32 1.442695, %v4909_v57  ;;  %v4919_v51 = vadd.f32 %v2637_v30, %v4970_v34  ;;  %vm2670_vm7 = vcmp.gt.f32.partialorder %v4909_v57, 0.0 }
0x10e9   :  { %v3674_v22 = vpop.f32.mrf.mxu0 }
0x10ea   :  { %v4906_v60 = vadd.f32 %v3674_v22, %v4483_v14  ;;  %v2676_v19 = vmul.f32 1.442695, %v4919_v51  ;;  %vm2668_vm9 = vcmp.gt.f32.partialorder %v4919_v51, 0.0 }
0x10eb   :  { %v2640_v25 = vpop.f32.mrf.mxu0 }
0x10ec   :  { %v2682_v31 = vmul.f32 1.442695, %v4906_v60  ;;  %v4914_v37 = vadd.f32 %v2640_v25, %v4968_v44  ;;  %vm2671_vm6 = vcmp.gt.f32.partialorder %v4906_v60, 0.0 }
0x10ed   :  { %v3677_v29 = vpop.f32.mrf.mxu0 }
0x10ee   :  { %v2662_v48 = vadd.f32 %v3677_v29, %v4473_v9  ;;  %v2678_v9 = vmul.f32 1.442695, %v4914_v37  ;;  %vm2669_vm8 = vcmp.gt.f32.partialorder %v4914_v37, 0.0 }
0x10ef   :  { %v2653_v54 = vpop.f32.mrf.mxu0 }
0x10f0   :  { %v2688_v52 = vmul.f32 1.442695, %v2662_v48  ;;  %v2654_v21 = vadd.f32 %v2653_v54, %v4969_v63  ;;  %vm2674_vm1 = vcmp.gt.f32.partialorder %v2662_v48, 0.0 }
0x10f1   :  { %v3678_v14 = vpop.f32.mrf.mxu0 }
0x10f2   :  { %3890 = vpow2.f32 %v2688_v52  ;;  %v2684_v13 = vmul.f32 1.442695, %v2654_v21  ;;  %v2665_v1 = vadd.f32 %v3678_v14, %v4971_v46  ;;  %vm2672_vm4 = vcmp.gt.f32.partialorder %v2654_v21, 0.0  ;;  %v3793_v52 = vld [vmem:[%s4955_s4 + $0x30] sm:$0xff]  }
0x10f3   :  { %3892 = vpow2.f32 %v2682_v31  ;;  %v2656_v50 = vpop.f32.mrf.mxu0 }
0x10f4   :  { %3894 = vpow2.f32 %v2684_v13  ;;  %v2690_v23 = vmul.f32 1.442695, %v2665_v1  ;;  %v2657_v36 = vadd.f32 %v2656_v50, %v4972_v41  ;;  %vm2675_vm3 = vcmp.gt.f32.partialorder %v2665_v1, 0.0 }
0x10f5   :  { %3896 = vpow2.f32 %v2680_v35 }
0x10f6   :  { %3898 = vpow2.f32 %v2690_v23  ;;  %v2686_v38 = vmul.f32 1.442695, %v2657_v36  ;;  %vm2673_vm5 = vcmp.gt.f32.partialorder %v2657_v36, 0.0 }
0x10f7   :  { %3900 = vpow2.f32 %v2678_v9  ;;  %v2794_v9 = vld [vmem:[%s4957_s6] sm:$0xf] }
0x10f8   :  { %3902 = vpow2.f32 %v2686_v38 }
0x10f9   :  { %3904 = vpow2.f32 %v2676_v19 }
0x10ff   :  { %v3891_v18 = vpop.eup %3890 }
0x1100   :  { %v3893_v32 = vpop.eup %3892  ;;  %v3253_v45 = vadd.f32 -1.0, %v3891_v18 }
0x1101   :  { %v3895_v59 = vpop.eup %3894  ;;  %v3250_v4 = vadd.f32 -1.0, %v3893_v32 }
0x1102   :  { %v3897_v58 = vpop.eup %3896  ;;  %v2706_v39 = vmul.f32 1.6732632, %v3253_v45  ;;  %v3251_v15 = vadd.f32 -1.0, %v3895_v59 }
0x1103   :  { %v3899_v5 = vpop.eup %3898  ;;  %v3249_v12 = vadd.f32 -1.0, %v3897_v58  ;;  %v2703_v27 = vmul.f32 1.6732632, %v3250_v4 }
0x1104   :  { %v3901_v42 = vpop.eup %3900  ;;  %v3254_v53 = vadd.f32 -1.0, %v3899_v5  ;;  %v2714_v7 = vsel %vm2674_vm1, %v2662_v48, %v2706_v39  ;;  %v2704_v17 = vmul.f32 1.6732632, %v3251_v15 }
0x1105   :  { %v3903_v0 = vpop.eup %3902  ;;  %v3248_v2 = vadd.f32 -1.0, %v3901_v42  ;;  %v2722_v33 = vmul.f32 1.050701, %v2714_v7  ;;  %v2702_v61 = vmul.f32 1.6732632, %v3249_v12  ;;  %v2711_v49 = vsel %vm2671_vm6, %v4906_v60, %v2703_v27 }
0x1106   :  { %v2707_v3 = vmul.f32 1.6732632, %v3254_v53  ;;  %v3252_v62 = vadd.f32 -1.0, %v3903_v0  ;;  %v3905_v24 = vpop.eup %3904  ;;  %v2712_v10 = vsel %vm2672_vm4, %v2654_v21, %v2704_v17  ;;  %v2719_v22 = vmul.f32 1.050701, %v2711_v49 }
0x1107   :  { %v3247_v11 = vadd.f32 -1.0, %v3905_v24  ;;  %v2701_v55 = vmul.f32 1.6732632, %v3248_v2  ;;  %v2720_v16 = vmul.f32 1.050701, %v2712_v10  ;;  %v2710_v28 = vsel %vm2670_vm7, %v4909_v57, %v2702_v61 }
0x1108   :  { %v2715_v56 = vsel %vm2675_vm3, %v2665_v1, %v2707_v3  ;;  %v2705_v26 = vmul.f32 1.6732632, %v3252_v62  ;;  %v2718_v48 = vmul.f32 1.050701, %v2710_v28 }
0x1109   :  { %v2723_v47 = vmul.f32 1.050701, %v2715_v56  ;;  %v2700_v30 = vmul.f32 1.6732632, %v3247_v11  ;;  %v2709_v29 = vsel %vm2669_vm8, %v4914_v37, %v2701_v55  ;;  %v2737_v37 = vpop.permute.xlu0 %2736 }
0x110a   :  { %v2713_v43 = vsel %vm2673_vm5, %v2657_v36, %v2705_v26  ;;  %v2728_v31 = vpack.c.bf16 %v2719_v22, %v2718_v48  ;;  %v2717_v44 = vmul.f32 1.050701, %v2709_v29 }
0x110b   :  { %v2730_v20 = vpack.c.bf16 %v2723_v47, %v2722_v33  ;;  %v2721_v8 = vmul.f32 1.050701, %v2713_v43  ;;  %v2708_v60 = vsel %vm2668_vm9, %v4919_v51, %v2700_v30 }
0x110c   :  { %v2716_v57 = vmul.f32 1.050701, %v2708_v60 }
0x110d   :  { %3680 = vmatpush3.bf16.msra.mxu0 %v2730_v20  ;;  %v2729_v25 = vpack.c.bf16 %v2721_v8, %v2720_v16 }
0x110e   :  { %3681 = vmatprep.subr.bf16.mxu0 %v4967_v40  ;;  %v2727_v54 = vpack.c.bf16 %v2717_v44, %v2716_v57 }
0x1111   :  { %3682 = vmatpush3.bf16.msra.mxu0 %v2729_v25 }
0x1112   :  { %3683 = vmatprep.subr.bf16.mxu0 %v4967_v40 }
0x1115   :  { %3684 = vmatpush3.bf16.msra.mxu0 %v2728_v31 }
0x1116   :  { %3685 = vmatprep.subr.bf16.mxu0 %v4967_v40 }
0x1119   :  { %3686 = vmatpush3.bf16.msra.mxu0 %v2727_v54 }
0x111a   :  { %3691 = vmatprep.subr.bf16.mxu0 %v4967_v40 }
0x111c   :  { %3688 = vmatmul.mubr.msk.bf16.vlgmr.msra.gmra.mxu0 %vm378_vm11, %v3793_v52  ;;  %vm2801_vm11 = vcmask 64512  }
0x111d   :  { %3693 = vmatprep.mubr.msk.bf16.mxu0 %vm3929_vm0, %v4967_v40  ;;  %v2799_v40 = vpop.permute.xlu1 %2798 }
0x11dc   :  { %v2785_v63 = vpop.f32.mrf.mxu0 }
0x11dd   :  { %v2786_v21 = vadd.f32 %v2785_v63, %v2737_v37 }
0x11de   :  { %v3689_v35 = vpop.f32.mrf.mxu0 }
0x11df   :  { %v2791_v14 = vadd.f32 %v2786_v21, %v4881_v6 }
0x11e0   :  { %v2788_v34 = vpop.f32.mrf.mxu0 }
0x11e1   :  { %v2792_v51 = vmax.f32 %v2791_v14, 0.0 }
0x11e2   :  { %v3690_v13 = vpop.f32.mrf.mxu0 }
0x11e3   :  { %v2793_v46 = vpack.c.bf16 %v2792_v51, %v2792_v51 }
0x11e5   :  { %v2806_v1 = vsel %vm140_vm2, %v2793_v46, 0 }
0x11e6   :  { %3692 = vmatpush3.bf16.msra.mxu0 %v2806_v1 }
0x11e9   :  { %3694 = vmatmul.mubr.msk.bf16.vlgmr.msra.gmra.mxu0 %vm2801_vm11, %v2794_v9 }
0x12a9   :  { %v2842_v50 = vpop.f32.mrf.mxu0 }
0x12aa   :  { %v2843_v23 = vadd.f32 %v2842_v50, %v2799_v40 }
0x12ab   :  { %v3695_v6 = vpop.f32.mrf.mxu0 }
0x12ac   :  { %2848 = vst [vmem:[#allocation2] sm:$0xff] %v2843_v23 }
0x12ad   :  { %v2845_v41 = vpop.f32.mrf.mxu0 }
0x12ae   :  { %3917 = shalt.err (!%p3914_p4)
}
0x12af   :  { %2858 = dma.vmem_to_hbm [thread:$0]  %s2856_s10, 128, %s4959_s8, [#allocation3]   ;;  %v3696_v36 = vpop.f32.mrf.mxu0 }
0x12b0   :  { %3926 = dma.done.wait [#allocation3], 128  }
0x12b1   :  { %3927 = vsyncadd [#allocation3], 4294967168 }
0x12b2   :  { %2862 = vsyncpa [#allocation3], 1 }

</bundles_post_ra>
